<compile_context>
chip_gen: v6e
topology: v6e:2x2x1
jax: 0.10.0
libtpu: 0.0.40
codegen_flags: <defaults>
</compile_context>

<pallas_src>
import functools

import jax
import jax.numpy as jnp
from jax.experimental import pallas as pl
from jax.experimental.pallas import tpu as pltpu


def _round_up(n, m):
    return ((n + m - 1) // m) * m


def lstm_dqn_kernel(x_ref, h0_ref, c0_ref,
                    w_ih_ref, w_hh_ref, b_ref,
                    fc_w_ref, fc_b_ref,
                    head_w_ref, head_b_ref,
                    q_ref, hn_ref, cn_ref,
                    *, T, B, Hp, A):
    """Unrolled single-layer LSTM -> fc+relu -> fused dueling head.

    x_ref      : (T*B, Din)  time-major rows, batch padded to a sublane multiple
    h0/c0      : (B, Hp)     hidden padded to a lane multiple (128)
    w_ih       : (Din, 4*Hp) gate-blocked [i|f|g|o], each block lane-dense
    w_hh       : (Hp, 4*Hp)
    b          : (1, 4*Hp)   b_ih + b_hh
    fc_w/fc_b  : (Hp, Hp) / (1, Hp)
    head_w/_b  : (Hp, A+1) / (1, A+1)   [advantage | value] fused
    """
    # ---- Hoisted input projection: one large matmul (M = T*B rows) + bias,
    #      completely off the serial recurrence critical path. ----------------
    xw = (jnp.dot(x_ref[...], w_ih_ref[...], preferred_element_type=jnp.float32)
          + b_ref[...])                                      # (T*B, 4*Hp)

    w_hh = w_hh_ref[...]                                     # hoisted, reused T times
    h = h0_ref[...]                                          # (B, Hp)
    c = c0_ref[...]

    # ---- Recurrence: fully unrolled; the only per-step matmul is h @ w_hh. ---
    for t in range(T):
        gates = xw[t * B:(t + 1) * B, :] + jnp.dot(
            h, w_hh, preferred_element_type=jnp.float32)     # (B, 4*Hp)
        # Lane-dense gate slabs (each slice is a whole multiple-of-128 block).
        i_g = jax.nn.sigmoid(gates[:, 0 * Hp:1 * Hp])
        f_g = jax.nn.sigmoid(gates[:, 1 * Hp:2 * Hp])
        g_g = jnp.tanh(gates[:, 2 * Hp:3 * Hp])
        o_g = jax.nn.sigmoid(gates[:, 3 * Hp:4 * Hp])
        c = f_g * c + i_g * g_g
        h = o_g * jnp.tanh(c)

    hn_ref[...] = h
    cn_ref[...] = c

    # ---- Epilogue: fc + relu, then one fused head matmul. --------------------
    out = jnp.maximum(
        jnp.dot(h, fc_w_ref[...], preferred_element_type=jnp.float32)
        + fc_b_ref[...], 0.0)                                # (B, Hp)
    av = (jnp.dot(out, head_w_ref[...], preferred_element_type=jnp.float32)
          + head_b_ref[...])                                 # (B, A+1) = [adv | val]
    adv = av[:, 0:A]
    val = av[:, A:A + 1]
    # q output last-dim A=4 < 128 -> consciously accepted masked store (tiny epilogue).
    q_ref[...] = val + (adv - jnp.mean(adv, axis=1, keepdims=True))


def pack_params(params, input_size, hidden_size, output_size):
    """Pad/fuse the raw (in, out)-layout params once for the kernel:
       * each LSTM gate block padded H -> Hp (lane-dense slabs, padding stays exactly 0)
       * fc padded to (Hp, Hp)
       * dueling-head weights fused into a single (Hp, A+1) matrix."""
    H, A = hidden_size, output_size
    Hp = _round_up(H, 128)

    def pad_gate_cols(w):  # (in, 4H) -> (in, 4*Hp), gate-blocked [i|f|g|o]
        n_in = w.shape[0]
        return jnp.pad(w.reshape(n_in, 4, H),
                       ((0, 0), (0, 0), (0, Hp - H))).reshape(n_in, 4 * Hp)

    w_ih = pad_gate_cols(params["w_ih"])                                   # (Din, 4Hp)
    w_hh = jnp.pad(pad_gate_cols(params["w_hh"]), ((0, Hp - H), (0, 0)))   # (Hp, 4Hp)
    b = pad_gate_cols(params["b"])                                         # (1, 4Hp)

    fc_w = jnp.pad(params["fc_w"], ((0, Hp - H), (0, Hp - H)))             # (Hp, Hp)
    fc_b = jnp.pad(params["fc_b"], ((0, 0), (0, Hp - H)))                  # (1, Hp)

    head_w = jnp.pad(jnp.concatenate([params["an_w"], params["vn_w"]], axis=1),
                     ((0, Hp - H), (0, 0)))                                # (Hp, A+1)
    head_b = jnp.concatenate([params["an_b"], params["vn_b"]], axis=1)     # (1, A+1)

    return dict(w_ih=w_ih, w_hh=w_hh, b=b, fc_w=fc_w, fc_b=fc_b,
                head_w=head_w, head_b=head_b, H=H, Hp=Hp, A=A)


def lstm_dqn_forward(x_btd, hidden, packed):
    """x_btd: (B, T, D_in) float32, batch_first like PyTorch.
       hidden: tuple of (1, B, H) arrays (h0, c0).
       packed: output of pack_params().
       Returns (q_values (B, A), (h_n (1,B,H), c_n (1,B,H)))."""
    h0, c0 = hidden
    B, T, Din = x_btd.shape
    H, Hp, A = packed["H"], packed["Hp"], packed["A"]
    Bp = _round_up(B, 8)          # fill sublanes; extra rows are free (latency-bound)

    # Time-major, pad batch, flatten time into rows: (T*Bp, Din).
    x_tbd = jnp.transpose(x_btd, (1, 0, 2))
    x_tbd = jnp.pad(x_tbd, ((0, 0), (0, Bp - B), (0, 0)))
    x2d = x_tbd.reshape(T * Bp, Din)

    h0p = jnp.pad(h0.reshape(B, H), ((0, Bp - B), (0, Hp - H)))
    c0p = jnp.pad(c0.reshape(B, H), ((0, Bp - B), (0, Hp - H)))

    vmem = pl.BlockSpec(memory_space=pltpu.MemorySpace.VMEM)
    kernel = functools.partial(lstm_dqn_kernel, T=T, B=Bp, Hp=Hp, A=A)

    q, hn, cn = pl.pallas_call(
        kernel,
        out_shape=(
            jax.ShapeDtypeStruct((Bp, A), jnp.float32),
            jax.ShapeDtypeStruct((Bp, Hp), jnp.float32),
            jax.ShapeDtypeStruct((Bp, Hp), jnp.float32),
        ),
        in_specs=[vmem] * 10,
        out_specs=(vmem, vmem, vmem),
    )(x2d, h0p, c0p,
      packed["w_ih"], packed["w_hh"], packed["b"],
      packed["fc_w"], packed["fc_b"],
      packed["head_w"], packed["head_b"])

    return (q[:B],
            (hn[:B, :H].reshape(1, B, H), cn[:B, :H].reshape(1, B, H)))


def init_params(key, input_size, hidden_size, output_size):
    """Deterministic init mimicking PyTorch's U(-1/sqrt(fan), 1/sqrt(fan)).
       Weights stored pre-transposed as (in, out); un-padded "logical" params."""
    H = hidden_size
    ks = jax.random.split(key, 10)
    s_lstm = 1.0 / jnp.sqrt(H)

    def u(k, shape, s):
        return jax.random.uniform(k, shape, jnp.float32, -s, s)

    w_ih = u(ks[0], (input_size, 4 * H), s_lstm)
    w_hh = u(ks[1], (H, 4 * H), s_lstm)
    b_ih = u(ks[2], (1, 4 * H), s_lstm)
    b_hh = u(ks[3], (1, 4 * H), s_lstm)

    s_fc = 1.0 / jnp.sqrt(H)
    fc_w = u(ks[4], (H, H), s_fc)
    fc_b = u(ks[5], (1, H), s_fc)
    an_w = u(ks[6], (H, output_size), s_fc)
    an_b = u(ks[7], (1, output_size), s_fc)
    vn_w = u(ks[8], (H, 1), s_fc)
    vn_b = u(ks[9], (1, 1), s_fc)

    return dict(w_ih=w_ih, w_hh=w_hh, b=b_ih + b_hh,
                fc_w=fc_w, fc_b=fc_b,
                an_w=an_w, an_b=an_b,
                vn_w=vn_w, vn_b=vn_b)


def reference_forward(x_btd, hidden, params):
    """Pure-JAX reference of the same math (un-padded), for correctness checking."""
    h, c = hidden[0][0], hidden[1][0]
    H = h.shape[-1]
    for t in range(x_btd.shape[1]):
        gates = x_btd[:, t, :] @ params["w_ih"] + h @ params["w_hh"] + params["b"]
        i = jax.nn.sigmoid(gates[:, 0 * H:1 * H])
        f = jax.nn.sigmoid(gates[:, 1 * H:2 * H])
        g = jnp.tanh(gates[:, 2 * H:3 * H])
        o = jax.nn.sigmoid(gates[:, 3 * H:4 * H])
        c = f * c + i * g
        h = o * jnp.tanh(c)
    out = jnp.maximum(h @ params["fc_w"] + params["fc_b"], 0.0)
    adv = out @ params["an_w"] + params["an_b"]
    val = out @ params["vn_w"] + params["vn_b"]
    q = val + (adv - jnp.mean(adv, axis=1, keepdims=True))
    return q, (h[None], c[None])


if __name__ == "__main__":
    B, T, INPUT, HIDDEN, ACTIONS = 2, 8, 16, 32, 4

    key = jax.random.PRNGKey(0)
    kx, kp = jax.random.split(key)
    x = jax.random.normal(kx, (B, T, INPUT), dtype=jnp.float32)
    params = init_params(kp, INPUT, HIDDEN, ACTIONS)
    packed = pack_params(params, INPUT, HIDDEN, ACTIONS)

    # init_hidden(batch_size): zeros of shape (1, B, H)
    h0 = jnp.zeros((1, B, HIDDEN), jnp.float32)
    c0 = jnp.zeros((1, B, HIDDEN), jnp.float32)

    q, (hn, cn) = lstm_dqn_forward(x, (h0, c0), packed)
    jax.block_until_ready(q)
    jax.block_until_ready(hn)
    jax.block_until_ready(cn)

    # Silent sanity check against the pure-JAX reference.
    q_ref, (hn_ref, cn_ref) = reference_forward(x, (h0, c0), params)
    assert q.shape == (B, ACTIONS) and hn.shape == (1, B, HIDDEN) and cn.shape == (1, B, HIDDEN)
    assert jnp.allclose(q, q_ref, atol=1e-4, rtol=1e-4)
    assert jnp.allclose(hn, hn_ref, atol=1e-4, rtol=1e-4)
    assert jnp.allclose(cn, cn_ref, atol=1e-4, rtol=1e-4)

    # TODO(synk): pinning w_hh in MXU weight registers via pltpu.matmul_push_rhs/
    # matmul_acc_lhs/matmul_pop (and a "parallel" batch grid for v7x dual-TC) is
    # left out; jnp.dot + full unroll already removes the dominant per-step costs
    # at these sizes.
    print("KERNEL_OK")
</pallas_src>

<mosaic_0001>
module attributes {stable_mosaic.version = 11 : i64} {
  func.func @lstm_dqn_kernel(%arg0: memref<64x16xf32, #tpu.memory_space<vmem>>, %arg1: memref<8x128xf32, #tpu.memory_space<vmem>>, %arg2: memref<8x128xf32, #tpu.memory_space<vmem>>, %arg3: memref<16x512xf32, #tpu.memory_space<vmem>>, %arg4: memref<128x512xf32, #tpu.memory_space<vmem>>, %arg5: memref<1x512xf32, #tpu.memory_space<vmem>>, %arg6: memref<128x128xf32, #tpu.memory_space<vmem>>, %arg7: memref<1x128xf32, #tpu.memory_space<vmem>>, %arg8: memref<128x5xf32, #tpu.memory_space<vmem>>, %arg9: memref<1x5xf32, #tpu.memory_space<vmem>>, %arg10: memref<8x4xf32, #tpu.memory_space<vmem>>, %arg11: memref<8x128xf32, #tpu.memory_space<vmem>>, %arg12: memref<8x128xf32, #tpu.memory_space<vmem>>) attributes {dimension_semantics = [], scalar_prefetch = 0 : i64, scratch_operands = 0 : i64, tpu.core_type = #tpu.core_type<tc>} {
    %c0 = arith.constant 0 : index
    %c0_0 = arith.constant 0 : index
    %0 = vector.load %arg0[%c0, %c0_0] : memref<64x16xf32, #tpu.memory_space<vmem>>, vector<64x16xf32>
    %c0_1 = arith.constant 0 : index
    %c0_2 = arith.constant 0 : index
    %1 = vector.load %arg3[%c0_1, %c0_2] : memref<16x512xf32, #tpu.memory_space<vmem>>, vector<16x512xf32>
    %cst = arith.constant dense<0.000000e+00> : vector<64x512xf32>
    %2 = tpu.matmul %0, %1, %cst {dimension_numbers = #tpu.dot_dimension_numbers<[1], [0], [0], [1], [0, 0, 1, 1], [], []>} : vector<64x16xf32>, vector<16x512xf32>, vector<64x512xf32> -> vector<64x512xf32>
    %c0_3 = arith.constant 0 : index
    %c0_4 = arith.constant 0 : index
    %3 = vector.load %arg5[%c0_3, %c0_4] : memref<1x512xf32, #tpu.memory_space<vmem>>, vector<1x512xf32>
    %4 = vector.broadcast %3 : vector<1x512xf32> to vector<64x512xf32>
    %5 = arith.addf %2, %4 : vector<64x512xf32>
    %c0_5 = arith.constant 0 : index
    %c0_6 = arith.constant 0 : index
    %6 = vector.load %arg4[%c0_5, %c0_6] : memref<128x512xf32, #tpu.memory_space<vmem>>, vector<128x512xf32>
    %c0_7 = arith.constant 0 : index
    %c0_8 = arith.constant 0 : index
    %7 = vector.load %arg1[%c0_7, %c0_8] : memref<8x128xf32, #tpu.memory_space<vmem>>, vector<8x128xf32>
    %c0_9 = arith.constant 0 : index
    %c0_10 = arith.constant 0 : index
    %8 = vector.load %arg2[%c0_9, %c0_10] : memref<8x128xf32, #tpu.memory_space<vmem>>, vector<8x128xf32>
    %9 = vector.extract_strided_slice %5 {offsets = [0, 0], sizes = [8, 512], strides = [1, 1]} : vector<64x512xf32> to vector<8x512xf32>
    %cst_11 = arith.constant dense<0.000000e+00> : vector<8x512xf32>
    %10 = tpu.matmul %7, %6, %cst_11 {dimension_numbers = #tpu.dot_dimension_numbers<[1], [0], [0], [1], [0, 0, 1, 1], [], []>} : vector<8x128xf32>, vector<128x512xf32>, vector<8x512xf32> -> vector<8x512xf32>
    %11 = arith.addf %9, %10 : vector<8x512xf32>
    %12 = vector.extract_strided_slice %11 {offsets = [0, 0], sizes = [8, 128], strides = [1, 1]} : vector<8x512xf32> to vector<8x128xf32>
    %13 = arith.negf %12 : vector<8x128xf32>
    %14 = math.exp %13 : vector<8x128xf32>
    %cst_12 = arith.constant 1.000000e+00 : f32
    %15 = vector.broadcast %cst_12 : f32 to vector<8x128xf32>
    %16 = arith.addf %15, %14 : vector<8x128xf32>
    %17 = arith.divf %15, %16 : vector<8x128xf32>
    %18 = vector.extract_strided_slice %11 {offsets = [0, 128], sizes = [8, 128], strides = [1, 1]} : vector<8x512xf32> to vector<8x128xf32>
    %19 = arith.negf %18 : vector<8x128xf32>
    %20 = math.exp %19 : vector<8x128xf32>
    %cst_13 = arith.constant 1.000000e+00 : f32
    %21 = vector.broadcast %cst_13 : f32 to vector<8x128xf32>
    %22 = arith.addf %21, %20 : vector<8x128xf32>
    %23 = arith.divf %21, %22 : vector<8x128xf32>
    %24 = vector.extract_strided_slice %11 {offsets = [0, 256], sizes = [8, 128], strides = [1, 1]} : vector<8x512xf32> to vector<8x128xf32>
    %25 = math.tanh %24 : vector<8x128xf32>
    %26 = vector.extract_strided_slice %11 {offsets = [0, 384], sizes = [8, 128], strides = [1, 1]} : vector<8x512xf32> to vector<8x128xf32>
    %27 = arith.negf %26 : vector<8x128xf32>
    %28 = math.exp %27 : vector<8x128xf32>
    %cst_14 = arith.constant 1.000000e+00 : f32
    %29 = vector.broadcast %cst_14 : f32 to vector<8x128xf32>
    %30 = arith.addf %29, %28 : vector<8x128xf32>
    %31 = arith.divf %29, %30 : vector<8x128xf32>
    %32 = arith.mulf %23, %8 : vector<8x128xf32>
    %33 = arith.mulf %17, %25 : vector<8x128xf32>
    %34 = arith.addf %32, %33 : vector<8x128xf32>
    %35 = math.tanh %34 : vector<8x128xf32>
    %36 = arith.mulf %31, %35 : vector<8x128xf32>
    %37 = vector.extract_strided_slice %5 {offsets = [8, 0], sizes = [8, 512], strides = [1, 1]} : vector<64x512xf32> to vector<8x512xf32>
    %cst_15 = arith.constant dense<0.000000e+00> : vector<8x512xf32>
    %38 = tpu.matmul %36, %6, %cst_15 {dimension_numbers = #tpu.dot_dimension_numbers<[1], [0], [0], [1], [0, 0, 1, 1], [], []>} : vector<8x128xf32>, vector<128x512xf32>, vector<8x512xf32> -> vector<8x512xf32>
    %39 = arith.addf %37, %38 : vector<8x512xf32>
    %40 = vector.extract_strided_slice %39 {offsets = [0, 0], sizes = [8, 128], strides = [1, 1]} : vector<8x512xf32> to vector<8x128xf32>
    %41 = arith.negf %40 : vector<8x128xf32>
    %42 = math.exp %41 : vector<8x128xf32>
    %cst_16 = arith.constant 1.000000e+00 : f32
    %43 = vector.broadcast %cst_16 : f32 to vector<8x128xf32>
    %44 = arith.addf %43, %42 : vector<8x128xf32>
    %45 = arith.divf %43, %44 : vector<8x128xf32>
    %46 = vector.extract_strided_slice %39 {offsets = [0, 128], sizes = [8, 128], strides = [1, 1]} : vector<8x512xf32> to vector<8x128xf32>
    %47 = arith.negf %46 : vector<8x128xf32>
    %48 = math.exp %47 : vector<8x128xf32>
    %cst_17 = arith.constant 1.000000e+00 : f32
    %49 = vector.broadcast %cst_17 : f32 to vector<8x128xf32>
    %50 = arith.addf %49, %48 : vector<8x128xf32>
    %51 = arith.divf %49, %50 : vector<8x128xf32>
    %52 = vector.extract_strided_slice %39 {offsets = [0, 256], sizes = [8, 128], strides = [1, 1]} : vector<8x512xf32> to vector<8x128xf32>
    %53 = math.tanh %52 : vector<8x128xf32>
    %54 = vector.extract_strided_slice %39 {offsets = [0, 384], sizes = [8, 128], strides = [1, 1]} : vector<8x512xf32> to vector<8x128xf32>
    %55 = arith.negf %54 : vector<8x128xf32>
    %56 = math.exp %55 : vector<8x128xf32>
    %cst_18 = arith.constant 1.000000e+00 : f32
    %57 = vector.broadcast %cst_18 : f32 to vector<8x128xf32>
    %58 = arith.addf %57, %56 : vector<8x128xf32>
    %59 = arith.divf %57, %58 : vector<8x128xf32>
    %60 = arith.mulf %51, %34 : vector<8x128xf32>
    %61 = arith.mulf %45, %53 : vector<8x128xf32>
    %62 = arith.addf %60, %61 : vector<8x128xf32>
    %63 = math.tanh %62 : vector<8x128xf32>
    %64 = arith.mulf %59, %63 : vector<8x128xf32>
    %65 = vector.extract_strided_slice %5 {offsets = [16, 0], sizes = [8, 512], strides = [1, 1]} : vector<64x512xf32> to vector<8x512xf32>
    %cst_19 = arith.constant dense<0.000000e+00> : vector<8x512xf32>
    %66 = tpu.matmul %64, %6, %cst_19 {dimension_numbers = #tpu.dot_dimension_numbers<[1], [0], [0], [1], [0, 0, 1, 1], [], []>} : vector<8x128xf32>, vector<128x512xf32>, vector<8x512xf32> -> vector<8x512xf32>
    %67 = arith.addf %65, %66 : vector<8x512xf32>
    %68 = vector.extract_strided_slice %67 {offsets = [0, 0], sizes = [8, 128], strides = [1, 1]} : vector<8x512xf32> to vector<8x128xf32>
    %69 = arith.negf %68 : vector<8x128xf32>
    %70 = math.exp %69 : vector<8x128xf32>
    %cst_20 = arith.constant 1.000000e+00 : f32
    %71 = vector.broadcast %cst_20 : f32 to vector<8x128xf32>
    %72 = arith.addf %71, %70 : vector<8x128xf32>
    %73 = arith.divf %71, %72 : vector<8x128xf32>
    %74 = vector.extract_strided_slice %67 {offsets = [0, 128], sizes = [8, 128], strides = [1, 1]} : vector<8x512xf32> to vector<8x128xf32>
    %75 = arith.negf %74 : vector<8x128xf32>
    %76 = math.exp %75 : vector<8x128xf32>
    %cst_21 = arith.constant 1.000000e+00 : f32
    %77 = vector.broadcast %cst_21 : f32 to vector<8x128xf32>
    %78 = arith.addf %77, %76 : vector<8x128xf32>
    %79 = arith.divf %77, %78 : vector<8x128xf32>
    %80 = vector.extract_strided_slice %67 {offsets = [0, 256], sizes = [8, 128], strides = [1, 1]} : vector<8x512xf32> to vector<8x128xf32>
    %81 = math.tanh %80 : vector<8x128xf32>
    %82 = vector.extract_strided_slice %67 {offsets = [0, 384], sizes = [8, 128], strides = [1, 1]} : vector<8x512xf32> to vector<8x128xf32>
    %83 = arith.negf %82 : vector<8x128xf32>
    %84 = math.exp %83 : vector<8x128xf32>
    %cst_22 = arith.constant 1.000000e+00 : f32
    %85 = vector.broadcast %cst_22 : f32 to vector<8x128xf32>
    %86 = arith.addf %85, %84 : vector<8x128xf32>
    %87 = arith.divf %85, %86 : vector<8x128xf32>
    %88 = arith.mulf %79, %62 : vector<8x128xf32>
    %89 = arith.mulf %73, %81 : vector<8x128xf32>
    %90 = arith.addf %88, %89 : vector<8x128xf32>
    %91 = math.tanh %90 : vector<8x128xf32>
    %92 = arith.mulf %87, %91 : vector<8x128xf32>
    %93 = vector.extract_strided_slice %5 {offsets = [24, 0], sizes = [8, 512], strides = [1, 1]} : vector<64x512xf32> to vector<8x512xf32>
    %cst_23 = arith.constant dense<0.000000e+00> : vector<8x512xf32>
    %94 = tpu.matmul %92, %6, %cst_23 {dimension_numbers = #tpu.dot_dimension_numbers<[1], [0], [0], [1], [0, 0, 1, 1], [], []>} : vector<8x128xf32>, vector<128x512xf32>, vector<8x512xf32> -> vector<8x512xf32>
    %95 = arith.addf %93, %94 : vector<8x512xf32>
    %96 = vector.extract_strided_slice %95 {offsets = [0, 0], sizes = [8, 128], strides = [1, 1]} : vector<8x512xf32> to vector<8x128xf32>
    %97 = arith.negf %96 : vector<8x128xf32>
    %98 = math.exp %97 : vector<8x128xf32>
    %cst_24 = arith.constant 1.000000e+00 : f32
    %99 = vector.broadcast %cst_24 : f32 to vector<8x128xf32>
    %100 = arith.addf %99, %98 : vector<8x128xf32>
    %101 = arith.divf %99, %100 : vector<8x128xf32>
    %102 = vector.extract_strided_slice %95 {offsets = [0, 128], sizes = [8, 128], strides = [1, 1]} : vector<8x512xf32> to vector<8x128xf32>
    %103 = arith.negf %102 : vector<8x128xf32>
    %104 = math.exp %103 : vector<8x128xf32>
    %cst_25 = arith.constant 1.000000e+00 : f32
    %105 = vector.broadcast %cst_25 : f32 to vector<8x128xf32>
    %106 = arith.addf %105, %104 : vector<8x128xf32>
    %107 = arith.divf %105, %106 : vector<8x128xf32>
    %108 = vector.extract_strided_slice %95 {offsets = [0, 256], sizes = [8, 128], strides = [1, 1]} : vector<8x512xf32> to vector<8x128xf32>
    %109 = math.tanh %108 : vector<8x128xf32>
    %110 = vector.extract_strided_slice %95 {offsets = [0, 384], sizes = [8, 128], strides = [1, 1]} : vector<8x512xf32> to vector<8x128xf32>
    %111 = arith.negf %110 : vector<8x128xf32>
    %112 = math.exp %111 : vector<8x128xf32>
    %cst_26 = arith.constant 1.000000e+00 : f32
    %113 = vector.broadcast %cst_26 : f32 to vector<8x128xf32>
    %114 = arith.addf %113, %112 : vector<8x128xf32>
    %115 = arith.divf %113, %114 : vector<8x128xf32>
    %116 = arith.mulf %107, %90 : vector<8x128xf32>
    %117 = arith.mulf %101, %109 : vector<8x128xf32>
    %118 = arith.addf %116, %117 : vector<8x128xf32>
    %119 = math.tanh %118 : vector<8x128xf32>
    %120 = arith.mulf %115, %119 : vector<8x128xf32>
    %121 = vector.extract_strided_slice %5 {offsets = [32, 0], sizes = [8, 512], strides = [1, 1]} : vector<64x512xf32> to vector<8x512xf32>
    %cst_27 = arith.constant dense<0.000000e+00> : vector<8x512xf32>
    %122 = tpu.matmul %120, %6, %cst_27 {dimension_numbers = #tpu.dot_dimension_numbers<[1], [0], [0], [1], [0, 0, 1, 1], [], []>} : vector<8x128xf32>, vector<128x512xf32>, vector<8x512xf32> -> vector<8x512xf32>
    %123 = arith.addf %121, %122 : vector<8x512xf32>
    %124 = vector.extract_strided_slice %123 {offsets = [0, 0], sizes = [8, 128], strides = [1, 1]} : vector<8x512xf32> to vector<8x128xf32>
    %125 = arith.negf %124 : vector<8x128xf32>
    %126 = math.exp %125 : vector<8x128xf32>
    %cst_28 = arith.constant 1.000000e+00 : f32
    %127 = vector.broadcast %cst_28 : f32 to vector<8x128xf32>
    %128 = arith.addf %127, %126 : vector<8x128xf32>
    %129 = arith.divf %127, %128 : vector<8x128xf32>
    %130 = vector.extract_strided_slice %123 {offsets = [0, 128], sizes = [8, 128], strides = [1, 1]} : vector<8x512xf32> to vector<8x128xf32>
    %131 = arith.negf %130 : vector<8x128xf32>
    %132 = math.exp %131 : vector<8x128xf32>
    %cst_29 = arith.constant 1.000000e+00 : f32
    %133 = vector.broadcast %cst_29 : f32 to vector<8x128xf32>
    %134 = arith.addf %133, %132 : vector<8x128xf32>
    %135 = arith.divf %133, %134 : vector<8x128xf32>
    %136 = vector.extract_strided_slice %123 {offsets = [0, 256], sizes = [8, 128], strides = [1, 1]} : vector<8x512xf32> to vector<8x128xf32>
    %137 = math.tanh %136 : vector<8x128xf32>
    %138 = vector.extract_strided_slice %123 {offsets = [0, 384], sizes = [8, 128], strides = [1, 1]} : vector<8x512xf32> to vector<8x128xf32>
    %139 = arith.negf %138 : vector<8x128xf32>
    %140 = math.exp %139 : vector<8x128xf32>
    %cst_30 = arith.constant 1.000000e+00 : f32
    %141 = vector.broadcast %cst_30 : f32 to vector<8x128xf32>
    %142 = arith.addf %141, %140 : vector<8x128xf32>
    %143 = arith.divf %141, %142 : vector<8x128xf32>
    %144 = arith.mulf %135, %118 : vector<8x128xf32>
    %145 = arith.mulf %129, %137 : vector<8x128xf32>
    %146 = arith.addf %144, %145 : vector<8x128xf32>
    %147 = math.tanh %146 : vector<8x128xf32>
    %148 = arith.mulf %143, %147 : vector<8x128xf32>
    %149 = vector.extract_strided_slice %5 {offsets = [40, 0], sizes = [8, 512], strides = [1, 1]} : vector<64x512xf32> to vector<8x512xf32>
    %cst_31 = arith.constant dense<0.000000e+00> : vector<8x512xf32>
    %150 = tpu.matmul %148, %6, %cst_31 {dimension_numbers = #tpu.dot_dimension_numbers<[1], [0], [0], [1], [0, 0, 1, 1], [], []>} : vector<8x128xf32>, vector<128x512xf32>, vector<8x512xf32> -> vector<8x512xf32>
    %151 = arith.addf %149, %150 : vector<8x512xf32>
    %152 = vector.extract_strided_slice %151 {offsets = [0, 0], sizes = [8, 128], strides = [1, 1]} : vector<8x512xf32> to vector<8x128xf32>
    %153 = arith.negf %152 : vector<8x128xf32>
    %154 = math.exp %153 : vector<8x128xf32>
    %cst_32 = arith.constant 1.000000e+00 : f32
    %155 = vector.broadcast %cst_32 : f32 to vector<8x128xf32>
    %156 = arith.addf %155, %154 : vector<8x128xf32>
    %157 = arith.divf %155, %156 : vector<8x128xf32>
    %158 = vector.extract_strided_slice %151 {offsets = [0, 128], sizes = [8, 128], strides = [1, 1]} : vector<8x512xf32> to vector<8x128xf32>
    %159 = arith.negf %158 : vector<8x128xf32>
    %160 = math.exp %159 : vector<8x128xf32>
    %cst_33 = arith.constant 1.000000e+00 : f32
    %161 = vector.broadcast %cst_33 : f32 to vector<8x128xf32>
    %162 = arith.addf %161, %160 : vector<8x128xf32>
    %163 = arith.divf %161, %162 : vector<8x128xf32>
    %164 = vector.extract_strided_slice %151 {offsets = [0, 256], sizes = [8, 128], strides = [1, 1]} : vector<8x512xf32> to vector<8x128xf32>
    %165 = math.tanh %164 : vector<8x128xf32>
    %166 = vector.extract_strided_slice %151 {offsets = [0, 384], sizes = [8, 128], strides = [1, 1]} : vector<8x512xf32> to vector<8x128xf32>
    %167 = arith.negf %166 : vector<8x128xf32>
    %168 = math.exp %167 : vector<8x128xf32>
    %cst_34 = arith.constant 1.000000e+00 : f32
    %169 = vector.broadcast %cst_34 : f32 to vector<8x128xf32>
    %170 = arith.addf %169, %168 : vector<8x128xf32>
    %171 = arith.divf %169, %170 : vector<8x128xf32>
    %172 = arith.mulf %163, %146 : vector<8x128xf32>
    %173 = arith.mulf %157, %165 : vector<8x128xf32>
    %174 = arith.addf %172, %173 : vector<8x128xf32>
    %175 = math.tanh %174 : vector<8x128xf32>
    %176 = arith.mulf %171, %175 : vector<8x128xf32>
    %177 = vector.extract_strided_slice %5 {offsets = [48, 0], sizes = [8, 512], strides = [1, 1]} : vector<64x512xf32> to vector<8x512xf32>
    %cst_35 = arith.constant dense<0.000000e+00> : vector<8x512xf32>
    %178 = tpu.matmul %176, %6, %cst_35 {dimension_numbers = #tpu.dot_dimension_numbers<[1], [0], [0], [1], [0, 0, 1, 1], [], []>} : vector<8x128xf32>, vector<128x512xf32>, vector<8x512xf32> -> vector<8x512xf32>
    %179 = arith.addf %177, %178 : vector<8x512xf32>
    %180 = vector.extract_strided_slice %179 {offsets = [0, 0], sizes = [8, 128], strides = [1, 1]} : vector<8x512xf32> to vector<8x128xf32>
    %181 = arith.negf %180 : vector<8x128xf32>
    %182 = math.exp %181 : vector<8x128xf32>
    %cst_36 = arith.constant 1.000000e+00 : f32
    %183 = vector.broadcast %cst_36 : f32 to vector<8x128xf32>
    %184 = arith.addf %183, %182 : vector<8x128xf32>
    %185 = arith.divf %183, %184 : vector<8x128xf32>
    %186 = vector.extract_strided_slice %179 {offsets = [0, 128], sizes = [8, 128], strides = [1, 1]} : vector<8x512xf32> to vector<8x128xf32>
    %187 = arith.negf %186 : vector<8x128xf32>
    %188 = math.exp %187 : vector<8x128xf32>
    %cst_37 = arith.constant 1.000000e+00 : f32
    %189 = vector.broadcast %cst_37 : f32 to vector<8x128xf32>
    %190 = arith.addf %189, %188 : vector<8x128xf32>
    %191 = arith.divf %189, %190 : vector<8x128xf32>
    %192 = vector.extract_strided_slice %179 {offsets = [0, 256], sizes = [8, 128], strides = [1, 1]} : vector<8x512xf32> to vector<8x128xf32>
    %193 = math.tanh %192 : vector<8x128xf32>
    %194 = vector.extract_strided_slice %179 {offsets = [0, 384], sizes = [8, 128], strides = [1, 1]} : vector<8x512xf32> to vector<8x128xf32>
    %195 = arith.negf %194 : vector<8x128xf32>
    %196 = math.exp %195 : vector<8x128xf32>
    %cst_38 = arith.constant 1.000000e+00 : f32
    %197 = vector.broadcast %cst_38 : f32 to vector<8x128xf32>
    %198 = arith.addf %197, %196 : vector<8x128xf32>
    %199 = arith.divf %197, %198 : vector<8x128xf32>
    %200 = arith.mulf %191, %174 : vector<8x128xf32>
    %201 = arith.mulf %185, %193 : vector<8x128xf32>
    %202 = arith.addf %200, %201 : vector<8x128xf32>
    %203 = math.tanh %202 : vector<8x128xf32>
    %204 = arith.mulf %199, %203 : vector<8x128xf32>
    %205 = vector.extract_strided_slice %5 {offsets = [56, 0], sizes = [8, 512], strides = [1, 1]} : vector<64x512xf32> to vector<8x512xf32>
    %cst_39 = arith.constant dense<0.000000e+00> : vector<8x512xf32>
    %206 = tpu.matmul %204, %6, %cst_39 {dimension_numbers = #tpu.dot_dimension_numbers<[1], [0], [0], [1], [0, 0, 1, 1], [], []>} : vector<8x128xf32>, vector<128x512xf32>, vector<8x512xf32> -> vector<8x512xf32>
    %207 = arith.addf %205, %206 : vector<8x512xf32>
    %208 = vector.extract_strided_slice %207 {offsets = [0, 0], sizes = [8, 128], strides = [1, 1]} : vector<8x512xf32> to vector<8x128xf32>
    %209 = arith.negf %208 : vector<8x128xf32>
    %210 = math.exp %209 : vector<8x128xf32>
    %cst_40 = arith.constant 1.000000e+00 : f32
    %211 = vector.broadcast %cst_40 : f32 to vector<8x128xf32>
    %212 = arith.addf %211, %210 : vector<8x128xf32>
    %213 = arith.divf %211, %212 : vector<8x128xf32>
    %214 = vector.extract_strided_slice %207 {offsets = [0, 128], sizes = [8, 128], strides = [1, 1]} : vector<8x512xf32> to vector<8x128xf32>
    %215 = arith.negf %214 : vector<8x128xf32>
    %216 = math.exp %215 : vector<8x128xf32>
    %cst_41 = arith.constant 1.000000e+00 : f32
    %217 = vector.broadcast %cst_41 : f32 to vector<8x128xf32>
    %218 = arith.addf %217, %216 : vector<8x128xf32>
    %219 = arith.divf %217, %218 : vector<8x128xf32>
    %220 = vector.extract_strided_slice %207 {offsets = [0, 256], sizes = [8, 128], strides = [1, 1]} : vector<8x512xf32> to vector<8x128xf32>
    %221 = math.tanh %220 : vector<8x128xf32>
    %222 = vector.extract_strided_slice %207 {offsets = [0, 384], sizes = [8, 128], strides = [1, 1]} : vector<8x512xf32> to vector<8x128xf32>
    %223 = arith.negf %222 : vector<8x128xf32>
    %224 = math.exp %223 : vector<8x128xf32>
    %cst_42 = arith.constant 1.000000e+00 : f32
    %225 = vector.broadcast %cst_42 : f32 to vector<8x128xf32>
    %226 = arith.addf %225, %224 : vector<8x128xf32>
    %227 = arith.divf %225, %226 : vector<8x128xf32>
    %228 = arith.mulf %219, %202 : vector<8x128xf32>
    %229 = arith.mulf %213, %221 : vector<8x128xf32>
    %230 = arith.addf %228, %229 : vector<8x128xf32>
    %231 = math.tanh %230 : vector<8x128xf32>
    %232 = arith.mulf %227, %231 : vector<8x128xf32>
    %c0_43 = arith.constant 0 : index
    %c0_44 = arith.constant 0 : index
    %233 = vector.load %arg11[%c0_43, %c0_44] : memref<8x128xf32, #tpu.memory_space<vmem>>, vector<8x128xf32>
    tpu.vector_store %arg11[%c0_43, %c0_44], %232 {strides = array<i32>} : memref<8x128xf32, #tpu.memory_space<vmem>>, vector<8x128xf32>,
    %c0_45 = arith.constant 0 : index
    %c0_46 = arith.constant 0 : index
    %234 = vector.load %arg12[%c0_45, %c0_46] : memref<8x128xf32, #tpu.memory_space<vmem>>, vector<8x128xf32>
    tpu.vector_store %arg12[%c0_45, %c0_46], %230 {strides = array<i32>} : memref<8x128xf32, #tpu.memory_space<vmem>>, vector<8x128xf32>,
    %c0_47 = arith.constant 0 : index
    %c0_48 = arith.constant 0 : index
    %235 = vector.load %arg6[%c0_47, %c0_48] : memref<128x128xf32, #tpu.memory_space<vmem>>, vector<128x128xf32>
    %cst_49 = arith.constant dense<0.000000e+00> : vector<8x128xf32>
    %236 = tpu.matmul %232, %235, %cst_49 {dimension_numbers = #tpu.dot_dimension_numbers<[1], [0], [0], [1], [0, 0, 1, 1], [], []>} : vector<8x128xf32>, vector<128x128xf32>, vector<8x128xf32> -> vector<8x128xf32>
    %c0_50 = arith.constant 0 : index
    %c0_51 = arith.constant 0 : index
    %237 = vector.load %arg7[%c0_50, %c0_51] : memref<1x128xf32, #tpu.memory_space<vmem>>, vector<1x128xf32>
    %238 = vector.broadcast %237 : vector<1x128xf32> to vector<8x128xf32>
    %239 = arith.addf %236, %238 : vector<8x128xf32>
    %cst_52 = arith.constant 0.000000e+00 : f32
    %240 = vector.broadcast %cst_52 : f32 to vector<8x128xf32>
    %241 = arith.maximumf %239, %240 : vector<8x128xf32>
    %c0_53 = arith.constant 0 : index
    %c0_54 = arith.constant 0 : index
    %242 = vector.load %arg8[%c0_53, %c0_54] : memref<128x5xf32, #tpu.memory_space<vmem>>, vector<128x5xf32>
    %cst_55 = arith.constant dense<0.000000e+00> : vector<8x5xf32>
    %243 = tpu.matmul %241, %242, %cst_55 {dimension_numbers = #tpu.dot_dimension_numbers<[1], [0], [0], [1], [0, 0, 1, 1], [], []>} : vector<8x128xf32>, vector<128x5xf32>, vector<8x5xf32> -> vector<8x5xf32>
    %c0_56 = arith.constant 0 : index
    %c0_57 = arith.constant 0 : index
    %244 = vector.load %arg9[%c0_56, %c0_57] : memref<1x5xf32, #tpu.memory_space<vmem>>, vector<1x5xf32>
    %245 = vector.broadcast %244 : vector<1x5xf32> to vector<8x5xf32>
    %246 = arith.addf %243, %245 : vector<8x5xf32>
    %247 = vector.extract_strided_slice %246 {offsets = [0, 0], sizes = [8, 4], strides = [1, 1]} : vector<8x5xf32> to vector<8x4xf32>
    %248 = vector.extract_strided_slice %246 {offsets = [0, 4], sizes = [8, 1], strides = [1, 1]} : vector<8x5xf32> to vector<8x1xf32>
    %cst_58 = arith.constant dense<0.000000e+00> : vector<8xf32>
    %249 = vector.multi_reduction <add>, %247, %cst_58 [1] : vector<8x4xf32> to vector<8xf32>
    %250 = vector.shape_cast %249 : vector<8xf32> to vector<8x1xf32>
    %cst_59 = arith.constant 4.000000e+00 : f32
    %251 = vector.broadcast %cst_59 : f32 to vector<8x1xf32>
    %252 = arith.divf %250, %251 : vector<8x1xf32>
    %253 = vector.broadcast %252 : vector<8x1xf32> to vector<8x4xf32>
    %254 = arith.subf %247, %253 : vector<8x4xf32>
    %255 = vector.broadcast %248 : vector<8x1xf32> to vector<8x4xf32>
    %256 = arith.addf %255, %254 : vector<8x4xf32>
    %c0_60 = arith.constant 0 : index
    %c0_61 = arith.constant 0 : index
    %257 = vector.load %arg10[%c0_60, %c0_61] : memref<8x4xf32, #tpu.memory_space<vmem>>, vector<8x4xf32>
    tpu.vector_store %arg10[%c0_60, %c0_61], %256 {strides = array<i32>} : memref<8x4xf32, #tpu.memory_space<vmem>>, vector<8x4xf32>,
    return
  }
}

</mosaic_0001>

<bundles_post_ra>
// kernel: tpu_custom_call.1
= control target key start
LH: loop header
LB: loop body
LE: loop exit
PB: predicated region body
PF: predicated region fallthrough
CT: control target
= control target key end

     0   :  { %18 = vsyncpa [#allocation3], 0  ;;  %s3658_s0 = inlined_call_operand.vmem [shape: f32[64,16], index: 0, kind: input, shape index: {}]   ;;  %s3659_s1 = inlined_call_operand.vmem [shape: f32[8,128], index: 1, kind: input, shape index: {}]   ;;  %s3660_s2 = inlined_call_operand.vmem [shape: f32[8,128], index: 2, kind: input, shape index: {}]   ;;  %s3661_s3 = inlined_call_operand.vmem [shape: f32[16,512], index: 3, kind: input, shape index: {}]   ;;  %s3662_s4 = inlined_call_operand.hbm [shape: f32[128,512], index: 4, kind: input, shape index: {}]   ;;  %s3663_s5 = inlined_call_operand.vmem [shape: f32[1,512], index: 5, kind: input, shape index: {}]   ;;  %s3664_s6 = inlined_call_operand.vmem [shape: f32[128,128], index: 6, kind: input, shape index: {}]   ;;  %s3665_s7 = inlined_call_operand.vmem [shape: f32[1,128], index: 7, kind: input, shape index: {}]   ;;  %s3666_s8 = inlined_call_operand.vmem [shape: f32[128,5], index: 8, kind: input, shape index: {}]   ;;  %s3667_s9 = inlined_call_operand.vmem [shape: f32[1,5], index: 9, kind: input, shape index: {}]   ;;  %s3668_s10 = inlined_call_operand.vmem [shape: f32[8,4], index: 10, kind: output, shape index: {0}]   ;;  %s3669_s11 = inlined_call_operand.hbm [shape: f32[8,128], index: 11, kind: output, shape index: {1}]   ;;  %s3670_s12 = inlined_call_operand.hbm [shape: f32[8,128], index: 12, kind: output, shape index: {2}]  }
   0x1   :  { %19 = vsyncpa [#allocation4], 0 }
   0x2   :  { %20 = vsyncpa [#allocation7], 0  ;;  %s2418_s21 = smov [#allocation2]  }
   0x3   :  { %s34_s22 = sshll.u32 %s2418_s21, 4  ;;  %s35_s22 = int_to_ptr.vmem [resolvable:$true] %s34_s22 }
   0x4   :  { %s2360_s23 = scalar_lea.vmem %s35_s22, 8192  ;;  %p2365_p1 = scmp.lt.s32.totalorder %s35_s22, %s35_s22 }
   0x5   :  { %p2361_p0 = scmp.ne.s32.totalorder %s35_s22, %s2360_s23  ;;  %p2366_p2 = scmp.lt.s32.totalorder %s2360_s23, %s2360_s23 }
   0x7   :  { %p2367_p3 = por %p2366_p2, %p2365_p1 }
   0x9   :  { %p2368_p4 = pnand %p2367_p3, %p2361_p0 }
   0xb   :  { %2371 = shalt.err (!%p2368_p4)
}
   0xc   :  { %s2419_s24 = smov 512   ;;  %s2420_s25 = smov 32  }
   0xd   :  { %40 = dma.hbm_to_vmem [thread:$0]  %s3662_s4, 8192, %s35_s22, [#allocation3], %s2419_s24, %s2419_s24, %s2420_s25  }
   0xe   :  { %2412 = dma.done.wait [#allocation3], 8192  }
   0xf   :  { %2413 = vsyncadd [#allocation3], 4294959104  ;;  %v3671_v0 = vmov 0.0   ;;  %v67_v1 = vld [vmem:[%s3661_s3 + $0x28] sm:$0xff]  ;;  %v69_v2 = vld [vmem:[%s3661_s3 + $0x38] sm:$0xff]  ;;  %vm92_vm0 = vcmask 130048  }
  0x10   :  { %181 = vmatprep.mubr.f32.mxu0 %v3671_v0  ;;  %294 = vmatprep.mubr.f32.mxu1 %v3671_v0  ;;  %v66_v3 = vld [vmem:[%s3661_s3 + $0x20] sm:$0xff]  ;;  %v68_v4 = vld [vmem:[%s3661_s3 + $0x30] sm:$0xff]  ;;  %v63_v5 = vld [vmem:[%s3661_s3 + $0x8] sm:$0xff]  ;;  %vm2422_vm1 = vmmov 0   ;;  %vm1958_vm2 = vcmask 31744  }
  0x11   :  { %145 = vmatprep.subr.mxu0 %v67_v1  ;;  %258 = vmatprep.subr.mxu1 %v69_v2  ;;  %v65_v6 = vld [vmem:[%s3661_s3 + $0x18] sm:$0xff]  ;;  %v62_v7 = vld [vmem:[%s3661_s3] sm:$0xff]  ;;  %v64_v8 = vld [vmem:[%s3661_s3 + $0x10] sm:$0xff] }
  0x12   :  { %146 = vmatpush1.msra.mxu0 %v66_v3  ;;  %259 = vmatpush1.msra.mxu1 %v68_v4  ;;  %v54_v9 = vld [vmem:[%s3658_s0] sm:$0xff]  ;;  %v2523_v10 = vld [vmem:[#allocation2 + $0x1e8] sm:$0xff]  ;;  %v2525_v11 = vld [vmem:[#allocation2 + $0x1f8] sm:$0xff] }
  0x13   :  { %147 = vmatprep.subr.mxu0 %v63_v5  ;;  %260 = vmatprep.subr.mxu1 %v65_v6  ;;  %3759 = vst [vmem:[#allocation11_spill] sm:$0xff] %v2523_v10  ;;  %3760 = vst [vmem:[#allocation12_spill] sm:$0xff] %v2525_v11  ;;  %v2527_v12 = vld [vmem:[#allocation2 + $0x1e0] sm:$0xff]  ;;  %v2529_v13 = vld [vmem:[#allocation2 + $0x1f0] sm:$0xff] }
  0x14   :  { %148 = vmatpush1.msra.mxu0 %v62_v7  ;;  %261 = vmatpush1.msra.mxu1 %v64_v8  ;;  %v2533_v14 = vld [vmem:[#allocation2 + $0x1c8] sm:$0xff]  ;;  %v2535_v15 = vld [vmem:[#allocation2 + $0x1d8] sm:$0xff]  ;;  %v2541_v16 = vld [vmem:[#allocation2 + $0x1c0] sm:$0xff] }
  0x15   :  { %2005 = vmatmul.mubr.msk.f32.vlgmr.msra.gmra.mxu0 %vm92_vm0, %v54_v9  ;;  %2013 = vmatmul.mubr.msk.f32.vlgmr.msra.gmra.mxu1 %vm92_vm0, %v54_v9  ;;  %v2543_v17 = vld [vmem:[#allocation2 + $0x1d0] sm:$0xff]  ;;  %v55_v18 = vld [vmem:[%s3658_s0 + $0x8] sm:$0xff]  ;;  %v2554_v20 = vld [vmem:[#allocation2 + $0x1b8] sm:$0xff] }
  0x16   :  { %409 = vmatprep.subr.mxu0 %v2523_v10  ;;  %480 = vmatprep.subr.mxu1 %v2525_v11  ;;  %v2552_v19 = vld [vmem:[#allocation2 + $0x1a8] sm:$0xff]  ;;  %v2558_v21 = vld [vmem:[#allocation2 + $0x1a0] sm:$0xff]  ;;  %v2560_v22 = vld [vmem:[#allocation2 + $0x1b0] sm:$0xff] }
  0x17   :  { %410 = vmatpush1.msra.mxu0 %v2527_v12  ;;  %481 = vmatpush1.msra.mxu1 %v2529_v13  ;;  %v2564_v23 = vld [vmem:[#allocation2 + $0x188] sm:$0xff]  ;;  %v2566_v24 = vld [vmem:[#allocation2 + $0x198] sm:$0xff]  ;;  %v2572_v25 = vld [vmem:[#allocation2 + $0x180] sm:$0xff] }
  0x18   :  { %411 = vmatprep.subr.mxu0 %v2533_v14  ;;  %482 = vmatprep.subr.mxu1 %v2535_v15  ;;  %v2574_v26 = vld [vmem:[#allocation2 + $0x190] sm:$0xff]  ;;  %v2583_v28 = vld [vmem:[#allocation2 + $0x168] sm:$0xff]  ;;  %v2585_v29 = vld [vmem:[#allocation2 + $0x178] sm:$0xff] }
  0x19   :  { %187 = vmatprep.mubr.f32.mxu0 %v3671_v0  ;;  %300 = vmatprep.mubr.f32.mxu1 %v3671_v0  ;;  %v56_v27 = vld [vmem:[%s3658_s0 + $0x10] sm:$0xff]  ;;  %v2589_v30 = vld [vmem:[#allocation2 + $0x160] sm:$0xff]  ;;  %v2595_v32 = vld [vmem:[#allocation2 + $0x148] sm:$0xff] }
  0x1a   :  { %412 = vmatpush1.msra.mxu0 %v2541_v16  ;;  %483 = vmatpush1.msra.mxu1 %v2543_v17  ;;  %v2591_v31 = vld [vmem:[#allocation2 + $0x170] sm:$0xff]  ;;  %v2597_v33 = vld [vmem:[#allocation2 + $0x158] sm:$0xff]  ;;  %v2603_v34 = vld [vmem:[#allocation2 + $0x140] sm:$0xff] }
  0x1b   :  { %2006 = vmatmul.mubr.msk.f32.gmra.mxu0 %vm92_vm0, %v55_v18  ;;  %2014 = vmatmul.mubr.msk.f32.gmra.mxu1 %vm92_vm0, %v55_v18  ;;  %v2605_v35 = vld [vmem:[#allocation2 + $0x150] sm:$0xff]  ;;  %v57_v36 = vld [vmem:[%s3658_s0 + $0x18] sm:$0xff]  ;;  %v2614_v37 = vld [vmem:[#allocation2 + $0x128] sm:$0xff] }
  0x1c   :  { %413 = vmatprep.subr.mxu0 %v2552_v19  ;;  %484 = vmatprep.subr.mxu1 %v2554_v20  ;;  %v2616_v38 = vld [vmem:[#allocation2 + $0x138] sm:$0xff]  ;;  %v2620_v39 = vld [vmem:[#allocation2 + $0x120] sm:$0xff]  ;;  %v2622_v40 = vld [vmem:[#allocation2 + $0x130] sm:$0xff] }
  0x1d   :  { %414 = vmatpush1.msra.mxu0 %v2558_v21  ;;  %485 = vmatpush1.msra.mxu1 %v2560_v22  ;;  %v2626_v41 = vld [vmem:[#allocation2 + $0x108] sm:$0xff]  ;;  %v2628_v42 = vld [vmem:[#allocation2 + $0x118] sm:$0xff]  ;;  %v2634_v43 = vld [vmem:[#allocation2 + $0x100] sm:$0xff] }
  0x1e   :  { %415 = vmatprep.subr.mxu0 %v2564_v23  ;;  %486 = vmatprep.subr.mxu1 %v2566_v24  ;;  %v2636_v44 = vld [vmem:[#allocation2 + $0x110] sm:$0xff]  ;;  %v58_v45 = vld [vmem:[%s3658_s0 + $0x20] sm:$0xff]  ;;  %v2645_v46 = vld [vmem:[#allocation2 + $0xe8] sm:$0xff] }
  0x1f   :  { %193 = vmatprep.mubr.f32.mxu0 %v3671_v0  ;;  %306 = vmatprep.mubr.f32.mxu1 %v3671_v0  ;;  %v2647_v47 = vld [vmem:[#allocation2 + $0xf8] sm:$0xff]  ;;  %v2651_v48 = vld [vmem:[#allocation2 + $0xe0] sm:$0xff]  ;;  %v2653_v49 = vld [vmem:[#allocation2 + $0xf0] sm:$0xff] }
  0x20   :  { %416 = vmatpush1.msra.mxu0 %v2572_v25  ;;  %487 = vmatpush1.msra.mxu1 %v2574_v26  ;;  %v2657_v50 = vld [vmem:[#allocation2 + $0xc8] sm:$0xff]  ;;  %v2659_v51 = vld [vmem:[#allocation2 + $0xd8] sm:$0xff]  ;;  %v2665_v52 = vld [vmem:[#allocation2 + $0xc0] sm:$0xff] }
  0x21   :  { %2007 = vmatmul.mubr.msk.f32.gmra.mxu0 %vm92_vm0, %v56_v27  ;;  %2015 = vmatmul.mubr.msk.f32.gmra.mxu1 %vm92_vm0, %v56_v27  ;;  %v2667_v53 = vld [vmem:[#allocation2 + $0xd0] sm:$0xff]  ;;  %v59_v54 = vld [vmem:[%s3658_s0 + $0x28] sm:$0xff]  ;;  %v2678_v56 = vld [vmem:[#allocation2 + $0xb8] sm:$0xff] }
  0x22   :  { %417 = vmatprep.subr.mxu0 %v2583_v28  ;;  %488 = vmatprep.subr.mxu1 %v2585_v29  ;;  %v2676_v55 = vld [vmem:[#allocation2 + $0xa8] sm:$0xff]  ;;  %v2682_v57 = vld [vmem:[#allocation2 + $0xa0] sm:$0xff]  ;;  %v2684_v58 = vld [vmem:[#allocation2 + $0xb0] sm:$0xff] }
  0x23   :  { %418 = vmatpush1.msra.mxu0 %v2589_v30  ;;  %489 = vmatpush1.msra.mxu1 %v2591_v31  ;;  %v2688_v59 = vld [vmem:[#allocation2 + $0x88] sm:$0xff]  ;;  %v2690_v60 = vld [vmem:[#allocation2 + $0x98] sm:$0xff]  ;;  %v2696_v61 = vld [vmem:[#allocation2 + $0x80] sm:$0xff] }
  0x24   :  { %419 = vmatprep.subr.mxu0 %v2595_v32  ;;  %490 = vmatprep.subr.mxu1 %v2597_v33  ;;  %3761 = vst [vmem:[#allocation13_spill] sm:$0xff] %v2688_v59  ;;  %3762 = vst [vmem:[#allocation14_spill] sm:$0xff] %v2690_v60  ;;  %v2698_v62 = vld [vmem:[#allocation2 + $0x90] sm:$0xff]  ;;  %v2707_v1 = vld [vmem:[#allocation2 + $0x68] sm:$0xff] }
  0x25   :  { %199 = vmatprep.mubr.f32.mxu0 %v3671_v0  ;;  %312 = vmatprep.mubr.f32.mxu1 %v3671_v0  ;;  %3763 = vst [vmem:[#allocation15_spill] sm:$0xff] %v2696_v61  ;;  %3764 = vst [vmem:[#allocation16_spill] sm:$0xff] %v2698_v62  ;;  %v60_v63 = vld [vmem:[%s3658_s0 + $0x30] sm:$0xff]  ;;  %v2709_v2 = vld [vmem:[#allocation2 + $0x78] sm:$0xff] }
  0x26   :  { %420 = vmatpush1.msra.mxu0 %v2603_v34  ;;  %491 = vmatpush1.msra.mxu1 %v2605_v35  ;;  %3765 = vst [vmem:[#allocation17_spill] sm:$0xff] %v2707_v1  ;;  %3766 = vst [vmem:[#allocation18_spill] sm:$0xff] %v2709_v2  ;;  %v2713_v3 = vld [vmem:[#allocation2 + $0x60] sm:$0xff]  ;;  %v2715_v4 = vld [vmem:[#allocation2 + $0x70] sm:$0xff] }
  0x27   :  { %2008 = vmatmul.mubr.msk.f32.gmra.mxu0 %vm92_vm0, %v57_v36  ;;  %2016 = vmatmul.mubr.msk.f32.gmra.mxu1 %vm92_vm0, %v57_v36  ;;  %3767 = vst [vmem:[#allocation19_spill] sm:$0xff] %v2713_v3  ;;  %3768 = vst [vmem:[#allocation20_spill] sm:$0xff] %v2715_v4  ;;  %v2719_v5 = vld [vmem:[#allocation2 + $0x48] sm:$0xff]  ;;  %v2721_v6 = vld [vmem:[#allocation2 + $0x58] sm:$0xff] }
  0x28   :  { %421 = vmatprep.subr.mxu0 %v2614_v37  ;;  %492 = vmatprep.subr.mxu1 %v2616_v38  ;;  %3769 = vst [vmem:[#allocation21_spill] sm:$0xff] %v2719_v5  ;;  %3770 = vst [vmem:[#allocation22_spill] sm:$0xff] %v2721_v6  ;;  %v2727_v7 = vld [vmem:[#allocation2 + $0x40] sm:$0xff]  ;;  %v2729_v8 = vld [vmem:[#allocation2 + $0x50] sm:$0xff] }
  0x29   :  { %422 = vmatpush1.msra.mxu0 %v2620_v39  ;;  %493 = vmatpush1.msra.mxu1 %v2622_v40  ;;  %3771 = vst [vmem:[#allocation23_spill] sm:$0xff] %v2727_v7  ;;  %3772 = vst [vmem:[#allocation24_spill] sm:$0xff] %v2729_v8  ;;  %v61_v9 = vld [vmem:[%s3658_s0 + $0x38] sm:$0xff]  ;;  %v2738_v18 = vld [vmem:[#allocation2 + $0x28] sm:$0xff]  ;;  %s2425_s0 = smov [#allocation6]  }
  0x2a   :  { %423 = vmatprep.subr.mxu0 %v2626_v41  ;;  %494 = vmatprep.subr.mxu1 %v2628_v42  ;;  %3773 = vst [vmem:[#allocation25_spill] sm:$0xff] %v2738_v18  ;;  %v2740_v27 = vld [vmem:[#allocation2 + $0x38] sm:$0xff]  ;;  %v2744_v36 = vld [vmem:[#allocation2 + $0x20] sm:$0xff]  ;;  %s1990_s21 = sshll.u32 %s2425_s0, 4  ;;  %s1991_s21 = int_to_ptr.vmem [resolvable:$true] %s1990_s21 }
  0x2b   :  { %205 = vmatprep.mubr.f32.mxu0 %v3671_v0  ;;  %318 = vmatprep.mubr.f32.mxu1 %v3671_v0  ;;  %3774 = vst [vmem:[#allocation26_spill] sm:$0xff] %v2740_v27  ;;  %3775 = vst [vmem:[#allocation27_spill] sm:$0xff] %v2744_v36 }
  0x2c   :  { %424 = vmatpush1.msra.mxu0 %v2634_v43  ;;  %495 = vmatpush1.msra.mxu1 %v2636_v44 }
  0x2d   :  { %2009 = vmatmul.mubr.msk.f32.gmra.mxu0 %vm92_vm0, %v58_v45  ;;  %2017 = vmatmul.mubr.msk.f32.gmra.mxu1 %vm92_vm0, %v58_v45  ;;  %v2746_v45 = vld [vmem:[#allocation2 + $0x30] sm:$0xff] }
  0x2e   :  { %425 = vmatprep.subr.mxu0 %v2645_v46  ;;  %496 = vmatprep.subr.mxu1 %v2647_v47  ;;  %3776 = vst [vmem:[#allocation28_spill] sm:$0xff] %v2746_v45 }
  0x2f   :  { %426 = vmatpush1.msra.mxu0 %v2651_v48  ;;  %497 = vmatpush1.msra.mxu1 %v2653_v49 }
  0x30   :  { %427 = vmatprep.subr.mxu0 %v2657_v50  ;;  %498 = vmatprep.subr.mxu1 %v2659_v51 }
  0x31   :  { %211 = vmatprep.mubr.f32.mxu0 %v3671_v0  ;;  %324 = vmatprep.mubr.f32.mxu1 %v3671_v0 }
  0x32   :  { %428 = vmatpush1.msra.mxu0 %v2665_v52  ;;  %499 = vmatpush1.msra.mxu1 %v2667_v53 }
  0x33   :  { %2010 = vmatmul.mubr.msk.f32.gmra.mxu0 %vm92_vm0, %v59_v54  ;;  %2018 = vmatmul.mubr.msk.f32.gmra.mxu1 %vm92_vm0, %v59_v54  ;;  %v2750_v54 = vld [vmem:[#allocation2 + $0x8] sm:$0xff] }
  0x34   :  { %429 = vmatprep.subr.mxu0 %v2676_v55  ;;  %500 = vmatprep.subr.mxu1 %v2678_v56  ;;  %3777 = vst [vmem:[#allocation29_spill] sm:$0xff] %v2750_v54 }
  0x35   :  { %430 = vmatpush1.msra.mxu0 %v2682_v57  ;;  %501 = vmatpush1.msra.mxu1 %v2684_v58 }
  0x36   :  { %431 = vmatprep.subr.mxu0 %v2688_v59  ;;  %502 = vmatprep.subr.mxu1 %v2690_v60 }
  0x37   :  { %217 = vmatprep.mubr.f32.mxu0 %v3671_v0  ;;  %330 = vmatprep.mubr.f32.mxu1 %v3671_v0 }
  0x38   :  { %432 = vmatpush1.msra.mxu0 %v2696_v61  ;;  %503 = vmatpush1.msra.mxu1 %v2698_v62 }
  0x39   :  { %2011 = vmatmul.mubr.msk.f32.gmra.mxu0 %vm92_vm0, %v60_v63  ;;  %2019 = vmatmul.mubr.msk.f32.gmra.mxu1 %vm92_vm0, %v60_v63  ;;  %v2752_v63 = vld [vmem:[#allocation2 + $0x18] sm:$0xff] }
  0x3a   :  { %433 = vmatprep.subr.mxu0 %v2707_v1  ;;  %504 = vmatprep.subr.mxu1 %v2709_v2  ;;  %3778 = vst [vmem:[#allocation30_spill] sm:$0xff] %v2752_v63 }
  0x3b   :  { %434 = vmatpush1.msra.mxu0 %v2713_v3  ;;  %505 = vmatpush1.msra.mxu1 %v2715_v4 }
  0x3c   :  { %435 = vmatprep.subr.mxu0 %v2719_v5  ;;  %506 = vmatprep.subr.mxu1 %v2721_v6 }
  0x3d   :  { %223 = vmatprep.mubr.f32.mxu0 %v3671_v0  ;;  %336 = vmatprep.mubr.f32.mxu1 %v3671_v0  ;;  %v2756_v0 = vld [vmem:[#allocation2] sm:$0xff] }
  0x3e   :  { %436 = vmatpush1.msra.mxu0 %v2727_v7  ;;  %507 = vmatpush1.msra.mxu1 %v2729_v8  ;;  %3779 = vst [vmem:[#allocation31_spill] sm:$0xff] %v2756_v0  ;;  %v2760_v8 = vld [vmem:[#allocation2 + $0x10] sm:$0xff] }
  0x3f   :  { %2012 = vmatmul.mubr.msk.f32.gmra.mxu0 %vm92_vm0, %v61_v9  ;;  %2020 = vmatmul.mubr.msk.f32.gmra.mxu1 %vm92_vm0, %v61_v9  ;;  %3780 = vst [vmem:[#allocation32_spill] sm:$0xff] %v2760_v8  ;;  %v407_v9 = vld [vmem:[%s3659_s1] sm:$0xff] }
  0x40   :  { %437 = vmatprep.subr.mxu0 %v2738_v18  ;;  %508 = vmatprep.subr.mxu1 %v2740_v27  ;;  %v3781_v18 = vmov 0.0  }
  0x41   :  { %438 = vmatpush1.msra.mxu0 %v2744_v36  ;;  %509 = vmatpush1.msra.mxu1 %v2746_v45 }
  0x42   :  { %439 = vmatprep.subr.mxu0 %v2750_v54  ;;  %510 = vmatprep.subr.mxu1 %v2752_v63 }
  0x43   :  { %440 = vmatpush1.msra.mxu0 %v2756_v0  ;;  %473 = vmatprep.mubr.f32.mxu0 %v3781_v18 }
  0x44   :  { %511 = vmatpush1.msra.mxu1 %v2760_v8  ;;  %544 = vmatprep.mubr.f32.mxu1 %v3781_v18 }
  0x45   :  { %474 = vmatmul.mubr.f32.vlgmr.msra.gmra.mxu0 %v407_v9  ;;  %545 = vmatmul.mubr.f32.vlgmr.msra.gmra.mxu1 %v407_v9  ;;  %v3782_v9 = vld [vmem:[#allocation24_spill] sm:$0xff] }
  0x46   :  { %579 = vmatprep.subr.mxu0 %v2523_v10  ;;  %650 = vmatprep.subr.mxu1 %v2525_v11 }
  0x47   :  { %580 = vmatpush1.msra.mxu0 %v2527_v12  ;;  %651 = vmatpush1.msra.mxu1 %v2529_v13 }
  0x48   :  { %581 = vmatprep.subr.mxu0 %v2533_v14  ;;  %652 = vmatprep.subr.mxu1 %v2535_v15 }
  0x49   :  { %582 = vmatpush1.msra.mxu0 %v2541_v16  ;;  %653 = vmatpush1.msra.mxu1 %v2543_v17 }
  0x4a   :  { %583 = vmatprep.subr.mxu0 %v2552_v19  ;;  %654 = vmatprep.subr.mxu1 %v2554_v20 }
  0x4b   :  { %584 = vmatpush1.msra.mxu0 %v2558_v21  ;;  %655 = vmatpush1.msra.mxu1 %v2560_v22 }
  0x4c   :  { %585 = vmatprep.subr.mxu0 %v2564_v23  ;;  %656 = vmatprep.subr.mxu1 %v2566_v24 }
  0x4d   :  { %586 = vmatpush1.msra.mxu0 %v2572_v25  ;;  %657 = vmatpush1.msra.mxu1 %v2574_v26 }
  0x4e   :  { %587 = vmatprep.subr.mxu0 %v2583_v28  ;;  %658 = vmatprep.subr.mxu1 %v2585_v29 }
  0x4f   :  { %588 = vmatpush1.msra.mxu0 %v2589_v30  ;;  %659 = vmatpush1.msra.mxu1 %v2591_v31 }
  0x50   :  { %589 = vmatprep.subr.mxu0 %v2595_v32  ;;  %660 = vmatprep.subr.mxu1 %v2597_v33 }
  0x51   :  { %590 = vmatpush1.msra.mxu0 %v2603_v34  ;;  %661 = vmatpush1.msra.mxu1 %v2605_v35 }
  0x52   :  { %591 = vmatprep.subr.mxu0 %v2614_v37  ;;  %662 = vmatprep.subr.mxu1 %v2616_v38 }
  0x53   :  { %592 = vmatpush1.msra.mxu0 %v2620_v39  ;;  %663 = vmatpush1.msra.mxu1 %v2622_v40 }
  0x54   :  { %593 = vmatprep.subr.mxu0 %v2626_v41  ;;  %664 = vmatprep.subr.mxu1 %v2628_v42 }
  0x55   :  { %594 = vmatpush1.msra.mxu0 %v2634_v43  ;;  %665 = vmatpush1.msra.mxu1 %v2636_v44 }
  0x56   :  { %595 = vmatprep.subr.mxu0 %v2645_v46  ;;  %666 = vmatprep.subr.mxu1 %v2647_v47 }
  0x57   :  { %596 = vmatpush1.msra.mxu0 %v2651_v48  ;;  %667 = vmatpush1.msra.mxu1 %v2653_v49 }
  0x58   :  { %597 = vmatprep.subr.mxu0 %v2657_v50  ;;  %668 = vmatprep.subr.mxu1 %v2659_v51 }
  0x59   :  { %598 = vmatpush1.msra.mxu0 %v2665_v52  ;;  %669 = vmatpush1.msra.mxu1 %v2667_v53 }
  0x5a   :  { %599 = vmatprep.subr.mxu0 %v2676_v55  ;;  %670 = vmatprep.subr.mxu1 %v2678_v56 }
  0x5b   :  { %600 = vmatpush1.msra.mxu0 %v2682_v57  ;;  %671 = vmatpush1.msra.mxu1 %v2684_v58 }
  0x5c   :  { %601 = vmatprep.subr.mxu0 %v2688_v59  ;;  %672 = vmatprep.subr.mxu1 %v2690_v60  ;;  %v3783_v60 = vld [vmem:[#allocation25_spill] sm:$0xff] }
  0x5d   :  { %602 = vmatpush1.msra.mxu0 %v2696_v61  ;;  %673 = vmatpush1.msra.mxu1 %v2698_v62 }
  0x5e   :  { %603 = vmatprep.subr.mxu0 %v2707_v1  ;;  %674 = vmatprep.subr.mxu1 %v2709_v2 }
  0x5f   :  { %604 = vmatpush1.msra.mxu0 %v2713_v3  ;;  %675 = vmatpush1.msra.mxu1 %v2715_v4 }
  0x60   :  { %605 = vmatprep.subr.mxu0 %v2719_v5  ;;  %676 = vmatprep.subr.mxu1 %v2721_v6 }
  0x61   :  { %606 = vmatpush1.msra.mxu0 %v2727_v7  ;;  %677 = vmatpush1.msra.mxu1 %v3782_v9 }
  0x62   :  { %607 = vmatprep.subr.mxu0 %v3783_v60  ;;  %678 = vmatprep.subr.mxu1 %v2740_v27  ;;  %v72_v27 = vlaneseq }
  0x63   :  { %608 = vmatpush1.msra.mxu0 %v2744_v36  ;;  %679 = vmatpush1.msra.mxu1 %v2746_v45 }
  0x64   :  { %609 = vmatprep.subr.mxu0 %v2750_v54  ;;  %680 = vmatprep.subr.mxu1 %v2752_v63  ;;  %v73_v36 = vshrl.u32 %v72_v27, 7 }
  0x65   :  { %610 = vmatpush1.msra.mxu0 %v2756_v0  ;;  %643 = vmatprep.mubr.f32.mxu0 %v3781_v18  ;;  %v70_v0 = vld [vmem:[%s3663_s5] sm:$0xf] }
  0x66   :  { %681 = vmatpush1.msra.mxu1 %v2760_v8  ;;  %714 = vmatprep.mubr.f32.mxu1 %v3781_v18  ;;  %v74_v54 = vsub.s32 0, %v73_v36  ;;  %v82_v63 = vsub.s32 2, %v73_v36  ;;  %v78_v18 = vsub.s32 1, %v73_v36 }
  0x67   :  { %749 = vmatprep.subr.mxu0 %v2523_v10  ;;  %820 = vmatprep.subr.mxu1 %v2525_v11  ;;  %v86_v10 = vsub.s32 3, %v73_v36 }
  0x68   :  { %v75_v7 = vrot.slane %v70_v0, %v74_v54  ;;  %v2850_v11 = vrot.slane %v70_v0, %v82_v63  ;;  %v79_v5 = vrot.slane %v70_v0, %v78_v18 }
  0x69   :  { %v2852_v4 = vrot.slane %v70_v0, %v86_v10 }
  0xd5   :  { %v2839_v60 = vpop.f32.mrf.mxu0  ;;  %v2841_v45 = vpop.f32.mrf.mxu1 }
  0xd7   :  { %v2846_v9 = vpop.f32.mrf.mxu0  ;;  %v2848_v8 = vpop.f32.mrf.mxu1 }
  0xdb   :  { %v189_v27 = vpop.f32.mrf.mxu0  ;;  %v302_v6 = vpop.f32.mrf.mxu1 }
  0xdc   :  { %v2854_v3 = vadd.f32 %v189_v27, %v75_v7  ;;  %v2857_v2 = vadd.f32 %v302_v6, %v2850_v11 }
  0xdd   :  { %v191_v1 = vpop.f32.mrf.mxu0  ;;  %v304_v62 = vpop.f32.mrf.mxu1 }
  0xde   :  { %3784 = vst [vmem:[#allocation33_spill] sm:$0xff] %v2854_v3  ;;  %3785 = vst [vmem:[#allocation34_spill] sm:$0xff] %v2857_v2  ;;  %v2859_v61 = vadd.f32 %v191_v1, %v79_v5  ;;  %v2862_v59 = vadd.f32 %v304_v62, %v2852_v4 }
  0xe0   :  { %3786 = vst [vmem:[#allocation35_spill] sm:$0xff] %v2859_v61  ;;  %3787 = vst [vmem:[#allocation36_spill] sm:$0xff] %v2862_v59 }
  0xe1   :  { %v195_v36 = vpop.f32.mrf.mxu0  ;;  %v308_v54 = vpop.f32.mrf.mxu1 }
  0xe2   :  { %v2864_v63 = vadd.f32 %v195_v36, %v75_v7  ;;  %v2867_v18 = vadd.f32 %v308_v54, %v2850_v11 }
  0xe3   :  { %v197_v0 = vpop.f32.mrf.mxu0  ;;  %v310_v10 = vpop.f32.mrf.mxu1 }
  0xe4   :  { %3788 = vst [vmem:[#allocation37_spill] sm:$0xff] %v2864_v63  ;;  %3789 = vst [vmem:[#allocation38_spill] sm:$0xff] %v2867_v18  ;;  %v2869_v27 = vadd.f32 %v197_v0, %v79_v5  ;;  %v2872_v6 = vadd.f32 %v310_v10, %v2852_v4 }
  0xe6   :  { %3790 = vst [vmem:[#allocation39_spill] sm:$0xff] %v2869_v27  ;;  %3791 = vst [vmem:[#allocation40_spill] sm:$0xff] %v2872_v6 }
  0xe7   :  { %v201_v2 = vpop.f32.mrf.mxu0  ;;  %v314_v1 = vpop.f32.mrf.mxu1 }
  0xe8   :  { %v2874_v61 = vadd.f32 %v201_v2, %v75_v7  ;;  %v2877_v62 = vadd.f32 %v314_v1, %v2850_v11 }
  0xe9   :  { %v203_v59 = vpop.f32.mrf.mxu0  ;;  %v316_v36 = vpop.f32.mrf.mxu1 }
  0xea   :  { %3792 = vst [vmem:[#allocation41_spill] sm:$0xff] %v2874_v61  ;;  %3793 = vst [vmem:[#allocation42_spill] sm:$0xff] %v2877_v62  ;;  %v2879_v63 = vadd.f32 %v203_v59, %v79_v5  ;;  %v2882_v54 = vadd.f32 %v316_v36, %v2852_v4 }
  0xec   :  { %3794 = vst [vmem:[#allocation43_spill] sm:$0xff] %v2879_v63  ;;  %3795 = vst [vmem:[#allocation44_spill] sm:$0xff] %v2882_v54 }
  0xed   :  { %v207_v18 = vpop.f32.mrf.mxu0  ;;  %v320_v0 = vpop.f32.mrf.mxu1 }
  0xee   :  { %v2884_v27 = vadd.f32 %v207_v18, %v75_v7  ;;  %v2887_v10 = vadd.f32 %v320_v0, %v2850_v11 }
  0xef   :  { %v209_v6 = vpop.f32.mrf.mxu0  ;;  %v322_v2 = vpop.f32.mrf.mxu1 }
  0xf0   :  { %3796 = vst [vmem:[#allocation45_spill] sm:$0xff] %v2884_v27  ;;  %3797 = vst [vmem:[#allocation46_spill] sm:$0xff] %v2887_v10  ;;  %v2889_v61 = vadd.f32 %v209_v6, %v79_v5  ;;  %v2892_v1 = vadd.f32 %v322_v2, %v2852_v4 }
  0xf2   :  { %3798 = vst [vmem:[#allocation47_spill] sm:$0xff] %v2889_v61  ;;  %3799 = vst [vmem:[#allocation48_spill] sm:$0xff] %v2892_v1 }
  0xf3   :  { %v213_v62 = vpop.f32.mrf.mxu0  ;;  %v326_v59 = vpop.f32.mrf.mxu1 }
  0xf4   :  { %v2894_v63 = vadd.f32 %v213_v62, %v75_v7  ;;  %v2897_v36 = vadd.f32 %v326_v59, %v2850_v11 }
  0xf5   :  { %v215_v54 = vpop.f32.mrf.mxu0  ;;  %v328_v18 = vpop.f32.mrf.mxu1 }
  0xf6   :  { %3800 = vst [vmem:[#allocation49_spill] sm:$0xff] %v2894_v63  ;;  %3801 = vst [vmem:[#allocation50_spill] sm:$0xff] %v2897_v36  ;;  %v2899_v27 = vadd.f32 %v215_v54, %v79_v5  ;;  %v2902_v0 = vadd.f32 %v328_v18, %v2852_v4 }
  0xf8   :  { %3802 = vst [vmem:[#allocation51_spill] sm:$0xff] %v2899_v27  ;;  %3803 = vst [vmem:[#allocation52_spill] sm:$0xff] %v2902_v0 }
  0xf9   :  { %v219_v10 = vpop.f32.mrf.mxu0  ;;  %v332_v6 = vpop.f32.mrf.mxu1 }
  0xfa   :  { %v2904_v61 = vadd.f32 %v219_v10, %v75_v7  ;;  %v2907_v2 = vadd.f32 %v332_v6, %v2850_v11 }
  0xfb   :  { %v221_v1 = vpop.f32.mrf.mxu0  ;;  %v334_v62 = vpop.f32.mrf.mxu1 }
  0xfc   :  { %3804 = vst [vmem:[#allocation53_spill] sm:$0xff] %v2904_v61  ;;  %3805 = vst [vmem:[#allocation54_spill] sm:$0xff] %v2907_v2  ;;  %v2909_v63 = vadd.f32 %v221_v1, %v79_v5  ;;  %v2912_v59 = vadd.f32 %v334_v62, %v2852_v4  ;;  %v184_v1 = vadd.f32 %v2839_v60, %v75_v7 }
  0xfd   :  { %v186_v62 = vadd.f32 %v2846_v9, %v79_v5 }
  0xfe   :  { %3806 = vst [vmem:[#allocation55_spill] sm:$0xff] %v2909_v63  ;;  %3807 = vst [vmem:[#allocation56_spill] sm:$0xff] %v2912_v59 }
  0xff   :  { %v225_v36 = vpop.f32.mrf.mxu0  ;;  %v338_v54 = vpop.f32.mrf.mxu1 }
 0x100   :  { %v2914_v27 = vadd.f32 %v225_v36, %v75_v7  ;;  %v2917_v18 = vadd.f32 %v338_v54, %v2850_v11 }
 0x101   :  { %v227_v0 = vpop.f32.mrf.mxu0  ;;  %v340_v10 = vpop.f32.mrf.mxu1 }
 0x102   :  { %3808 = vst [vmem:[#allocation57_spill] sm:$0xff] %v2914_v27  ;;  %3809 = vst [vmem:[#allocation58_spill] sm:$0xff] %v2917_v18  ;;  %v2919_v61 = vadd.f32 %v227_v0, %v79_v5  ;;  %v2922_v6 = vadd.f32 %v340_v10, %v2852_v4  ;;  %v299_v0 = vadd.f32 %v2848_v8, %v2852_v4  ;;  %v408_v4 = vld [vmem:[%s3660_s2] sm:$0xff] }
 0x103   :  { %v297_v10 = vadd.f32 %v2841_v45, %v2850_v11 }
 0x104   :  { %3810 = vst [vmem:[#allocation59_spill] sm:$0xff] %v2919_v61  ;;  %3811 = vst [vmem:[#allocation60_spill] sm:$0xff] %v2922_v6 }
 0x105   :  { %v475_v2 = vpop.f32.mrf.mxu0  ;;  %v546_v27 = vpop.f32.mrf.mxu1 }
 0x106   :  { %v551_v59 = vadd.f32 %v475_v2, %v184_v1  ;;  %v553_v6 = vadd.f32 %v546_v27, %v297_v10  ;;  %v3816_v10 = vld [vmem:[#allocation17_spill] sm:$0xff] }
 0x107   :  { %v477_v63 = vpop.f32.mrf.mxu0  ;;  %v548_v18 = vpop.f32.mrf.mxu1 }
 0x108   :  { %v2021_v3 = vmul.f32 -1.442695, %v551_v59  ;;  %v552_v36 = vadd.f32 %v477_v63, %v186_v62  ;;  %v554_v61 = vadd.f32 %v548_v18, %v299_v0  ;;  %v3812_v62 = vld [vmem:[#allocation13_spill] sm:$0xff]  ;;  %v3815_v0 = vld [vmem:[#allocation16_spill] sm:$0xff] }
 0x10a   :  { %2160 = vpow2.f32 %v2021_v3  ;;  %v2022_v54 = vmul.f32 -1.442695, %v552_v36  ;;  %v2023_v60 = vmul.f32 -1.442695, %v554_v61  ;;  %v3813_v36 = vld [vmem:[#allocation14_spill] sm:$0xff] }
 0x10c   :  { %2162 = vpow2.f32 %v2022_v54  ;;  %v3814_v54 = vld [vmem:[#allocation15_spill] sm:$0xff] }
 0x10d   :  { %2164 = vpow2.f32 %v2023_v60  ;;  %v3817_v60 = vld [vmem:[#allocation18_spill] sm:$0xff] }
 0x117   :  { %v2161_v7 = vpop.eup %2160 }
 0x118   :  { %v558_v5 = vadd.f32 1.0, %v2161_v7  ;;  %v3818_v7 = vld [vmem:[#allocation19_spill] sm:$0xff] }
 0x119   :  { %v2163_v9 = vpop.eup %2162 }
 0x11a   :  { %2166 = vrcp.f32 %v558_v5  ;;  %v564_v63 = vadd.f32 1.0, %v2163_v9  ;;  %v2165_v3 = vpop.eup %2164  ;;  %v3819_v5 = vld [vmem:[#allocation20_spill] sm:$0xff]  ;;  %v3820_v9 = vld [vmem:[#allocation21_spill] sm:$0xff] }
 0x11b   :  { %2168 = vtanh.f32 %v553_v6  ;;  %v571_v18 = vadd.f32 1.0, %v2165_v3  ;;  %v3822_v3 = vld [vmem:[#allocation23_spill] sm:$0xff] }
 0x11c   :  { %2170 = vrcp.f32 %v564_v63  ;;  %v3821_v63 = vld [vmem:[#allocation22_spill] sm:$0xff] }
 0x11d   :  { %2172 = vrcp.f32 %v571_v18  ;;  %v3827_v18 = vld [vmem:[#allocation28_spill] sm:$0xff] }
 0x127   :  { %v2167_v2 = vpop.eup %2166 }
 0x128   :  { %v2169_v8 = vpop.eup %2168 }
 0x129   :  { %v2171_v59 = vpop.eup %2170  ;;  %v575_v11 = vmul.f32 %v2169_v8, %v2167_v2  ;;  %v3823_v2 = vld [vmem:[#allocation24_spill] sm:$0xff]  ;;  %v3825_v8 = vld [vmem:[#allocation26_spill] sm:$0xff] }
 0x12a   :  { %v574_v61 = vmul.f32 %v2171_v59, %v408_v4  ;;  %v2173_v27 = vpop.eup %2172  ;;  %v3824_v4 = vld [vmem:[#allocation25_spill] sm:$0xff]  ;;  %v3826_v59 = vld [vmem:[#allocation27_spill] sm:$0xff] }
 0x12c   :  { %v2933_v45 = vadd.f32 %v575_v11, %v574_v61  ;;  %v3828_v11 = vld [vmem:[#allocation29_spill] sm:$0xff]  ;;  %v3829_v61 = vld [vmem:[#allocation30_spill] sm:$0xff] }
 0x12e   :  { %2174 = vtanh.f32 %v2933_v45 }
 0x13b   :  { %v2175_v1 = vpop.eup %2174 }
 0x13c   :  { %v578_v6 = vmul.f32 %v2175_v1, %v2173_v27  ;;  %v3830_v27 = vld [vmem:[#allocation31_spill] sm:$0xff]  ;;  %v3831_v1 = vmov 0.0  }
 0x13e   :  { %644 = vmatmul.mubr.f32.vlgmr.msra.gmra.mxu0 %v578_v6  ;;  %715 = vmatmul.mubr.f32.vlgmr.msra.gmra.mxu1 %v578_v6  ;;  %v3832_v6 = vld [vmem:[#allocation32_spill] sm:$0xff] }
 0x13f   :  { %750 = vmatpush1.msra.mxu0 %v2527_v12  ;;  %821 = vmatpush1.msra.mxu1 %v2529_v13 }
 0x140   :  { %751 = vmatprep.subr.mxu0 %v2533_v14  ;;  %822 = vmatprep.subr.mxu1 %v2535_v15 }
 0x141   :  { %752 = vmatpush1.msra.mxu0 %v2541_v16  ;;  %823 = vmatpush1.msra.mxu1 %v2543_v17 }
 0x142   :  { %753 = vmatprep.subr.mxu0 %v2552_v19  ;;  %824 = vmatprep.subr.mxu1 %v2554_v20 }
 0x143   :  { %754 = vmatpush1.msra.mxu0 %v2558_v21  ;;  %825 = vmatpush1.msra.mxu1 %v2560_v22 }
 0x144   :  { %755 = vmatprep.subr.mxu0 %v2564_v23  ;;  %826 = vmatprep.subr.mxu1 %v2566_v24 }
 0x145   :  { %756 = vmatpush1.msra.mxu0 %v2572_v25  ;;  %827 = vmatpush1.msra.mxu1 %v2574_v26 }
 0x146   :  { %757 = vmatprep.subr.mxu0 %v2583_v28  ;;  %828 = vmatprep.subr.mxu1 %v2585_v29 }
 0x147   :  { %758 = vmatpush1.msra.mxu0 %v2589_v30  ;;  %829 = vmatpush1.msra.mxu1 %v2591_v31 }
 0x148   :  { %759 = vmatprep.subr.mxu0 %v2595_v32  ;;  %830 = vmatprep.subr.mxu1 %v2597_v33 }
 0x149   :  { %760 = vmatpush1.msra.mxu0 %v2603_v34  ;;  %831 = vmatpush1.msra.mxu1 %v2605_v35 }
 0x14a   :  { %761 = vmatprep.subr.mxu0 %v2614_v37  ;;  %832 = vmatprep.subr.mxu1 %v2616_v38 }
 0x14b   :  { %762 = vmatpush1.msra.mxu0 %v2620_v39  ;;  %833 = vmatpush1.msra.mxu1 %v2622_v40 }
 0x14c   :  { %763 = vmatprep.subr.mxu0 %v2626_v41  ;;  %834 = vmatprep.subr.mxu1 %v2628_v42 }
 0x14d   :  { %764 = vmatpush1.msra.mxu0 %v2634_v43  ;;  %835 = vmatpush1.msra.mxu1 %v2636_v44 }
 0x14e   :  { %765 = vmatprep.subr.mxu0 %v2645_v46  ;;  %836 = vmatprep.subr.mxu1 %v2647_v47 }
 0x14f   :  { %766 = vmatpush1.msra.mxu0 %v2651_v48  ;;  %837 = vmatpush1.msra.mxu1 %v2653_v49 }
 0x150   :  { %767 = vmatprep.subr.mxu0 %v2657_v50  ;;  %838 = vmatprep.subr.mxu1 %v2659_v51 }
 0x151   :  { %768 = vmatpush1.msra.mxu0 %v2665_v52  ;;  %839 = vmatpush1.msra.mxu1 %v2667_v53 }
 0x152   :  { %769 = vmatprep.subr.mxu0 %v2676_v55  ;;  %840 = vmatprep.subr.mxu1 %v2678_v56 }
 0x153   :  { %770 = vmatpush1.msra.mxu0 %v2682_v57  ;;  %841 = vmatpush1.msra.mxu1 %v2684_v58 }
 0x154   :  { %771 = vmatprep.subr.mxu0 %v3812_v62  ;;  %842 = vmatprep.subr.mxu1 %v3813_v36 }
 0x155   :  { %772 = vmatpush1.msra.mxu0 %v3814_v54  ;;  %843 = vmatpush1.msra.mxu1 %v3815_v0 }
 0x156   :  { %773 = vmatprep.subr.mxu0 %v3816_v10  ;;  %844 = vmatprep.subr.mxu1 %v3817_v60  ;;  %v3838_v60 = vld [vmem:[#allocation34_spill] sm:$0xff] }
 0x157   :  { %774 = vmatpush1.msra.mxu0 %v3818_v7  ;;  %845 = vmatpush1.msra.mxu1 %v3819_v5  ;;  %v3837_v7 = vld [vmem:[#allocation36_spill] sm:$0xff] }
 0x158   :  { %775 = vmatprep.subr.mxu0 %v3820_v9  ;;  %846 = vmatprep.subr.mxu1 %v3821_v63 }
 0x159   :  { %776 = vmatpush1.msra.mxu0 %v3822_v3  ;;  %847 = vmatpush1.msra.mxu1 %v3823_v2  ;;  %v3833_v2 = vld [vmem:[#allocation11_spill] sm:$0xff] }
 0x15a   :  { %777 = vmatprep.subr.mxu0 %v3824_v4  ;;  %848 = vmatprep.subr.mxu1 %v3825_v8  ;;  %v3834_v4 = vld [vmem:[#allocation12_spill] sm:$0xff] }
 0x15b   :  { %778 = vmatpush1.msra.mxu0 %v3826_v59  ;;  %849 = vmatpush1.msra.mxu1 %v3827_v18  ;;  %v3835_v59 = vld [vmem:[#allocation33_spill] sm:$0xff] }
 0x15c   :  { %779 = vmatprep.subr.mxu0 %v3828_v11  ;;  %850 = vmatprep.subr.mxu1 %v3829_v61  ;;  %v3836_v11 = vld [vmem:[#allocation35_spill] sm:$0xff] }
 0x15d   :  { %780 = vmatpush1.msra.mxu0 %v3830_v27  ;;  %813 = vmatprep.mubr.f32.mxu0 %v3831_v1 }
 0x15e   :  { %851 = vmatpush1.msra.mxu1 %v3832_v6  ;;  %884 = vmatprep.mubr.f32.mxu1 %v3831_v1 }
 0x15f   :  { %919 = vmatprep.subr.mxu0 %v3833_v2  ;;  %990 = vmatprep.subr.mxu1 %v3834_v4 }
 0x1fe   :  { %v645_v8 = vpop.f32.mrf.mxu0  ;;  %v716_v61 = vpop.f32.mrf.mxu1 }
 0x1ff   :  { %v721_v3 = vadd.f32 %v645_v8, %v3835_v59  ;;  %v723_v1 = vadd.f32 %v716_v61, %v3838_v60 }
 0x200   :  { %v647_v18 = vpop.f32.mrf.mxu0  ;;  %v718_v5 = vpop.f32.mrf.mxu1 }
 0x201   :  { %v2024_v63 = vmul.f32 -1.442695, %v721_v3  ;;  %v722_v9 = vadd.f32 %v647_v18, %v3836_v11  ;;  %v724_v6 = vadd.f32 %v718_v5, %v3837_v7 }
 0x203   :  { %2176 = vpow2.f32 %v2024_v63  ;;  %v2025_v27 = vmul.f32 -1.442695, %v722_v9  ;;  %v2026_v10 = vmul.f32 -1.442695, %v724_v6  ;;  %v3861_v6 = vld [vmem:[#allocation40_spill] sm:$0xff] }
 0x205   :  { %2178 = vpow2.f32 %v2025_v27 }
 0x206   :  { %2180 = vtanh.f32 %v723_v1 }
 0x207   :  { %2182 = vpow2.f32 %v2026_v10 }
 0x210   :  { %v2177_v2 = vpop.eup %2176 }
 0x211   :  { %v728_v0 = vadd.f32 1.0, %v2177_v2 }
 0x212   :  { %v2179_v4 = vpop.eup %2178 }
 0x213   :  { %2184 = vrcp.f32 %v728_v0  ;;  %v734_v8 = vadd.f32 1.0, %v2179_v4  ;;  %v2181_v3 = vpop.eup %2180  ;;  %v3862_v4 = vld [vmem:[#allocation38_spill] sm:$0xff] }
 0x214   :  { %v2183_v59 = vpop.eup %2182 }
 0x215   :  { %2186 = vrcp.f32 %v734_v8  ;;  %v741_v11 = vadd.f32 1.0, %v2183_v59 }
 0x217   :  { %2188 = vrcp.f32 %v741_v11 }
 0x220   :  { %v2185_v63 = vpop.eup %2184 }
 0x221   :  { %v745_v18 = vmul.f32 %v2185_v63, %v2181_v3 }
 0x222   :  { %v2187_v9 = vpop.eup %2186 }
 0x223   :  { %v744_v27 = vmul.f32 %v2187_v9, %v2933_v45 }
 0x224   :  { %v2189_v60 = vpop.eup %2188 }
 0x225   :  { %v3007_v7 = vadd.f32 %v745_v18, %v744_v27 }
 0x227   :  { %2190 = vtanh.f32 %v3007_v7 }
 0x234   :  { %v2191_v5 = vpop.eup %2190 }
 0x235   :  { %v748_v61 = vmul.f32 %v2191_v5, %v2189_v60 }
 0x237   :  { %814 = vmatmul.mubr.f32.vlgmr.msra.gmra.mxu0 %v748_v61  ;;  %885 = vmatmul.mubr.f32.vlgmr.msra.gmra.mxu1 %v748_v61 }
 0x238   :  { %920 = vmatpush1.msra.mxu0 %v2527_v12  ;;  %991 = vmatpush1.msra.mxu1 %v2529_v13  ;;  %v3839_v12 = vld [vmem:[#allocation16_spill] sm:$0xff]  ;;  %v3840_v13 = vld [vmem:[#allocation17_spill] sm:$0xff] }
 0x239   :  { %921 = vmatprep.subr.mxu0 %v2533_v14  ;;  %992 = vmatprep.subr.mxu1 %v2535_v15  ;;  %v3841_v14 = vld [vmem:[#allocation18_spill] sm:$0xff]  ;;  %v3842_v15 = vld [vmem:[#allocation19_spill] sm:$0xff] }
 0x23a   :  { %922 = vmatpush1.msra.mxu0 %v2541_v16  ;;  %993 = vmatpush1.msra.mxu1 %v2543_v17  ;;  %v3843_v16 = vld [vmem:[#allocation20_spill] sm:$0xff]  ;;  %v3844_v17 = vld [vmem:[#allocation21_spill] sm:$0xff] }
 0x23b   :  { %923 = vmatprep.subr.mxu0 %v2552_v19  ;;  %994 = vmatprep.subr.mxu1 %v2554_v20  ;;  %v3845_v19 = vld [vmem:[#allocation22_spill] sm:$0xff]  ;;  %v3846_v20 = vld [vmem:[#allocation23_spill] sm:$0xff] }
 0x23c   :  { %924 = vmatpush1.msra.mxu0 %v2558_v21  ;;  %995 = vmatpush1.msra.mxu1 %v2560_v22  ;;  %v3847_v21 = vld [vmem:[#allocation24_spill] sm:$0xff]  ;;  %v3848_v22 = vld [vmem:[#allocation25_spill] sm:$0xff] }
 0x23d   :  { %925 = vmatprep.subr.mxu0 %v2564_v23  ;;  %996 = vmatprep.subr.mxu1 %v2566_v24  ;;  %v3849_v23 = vld [vmem:[#allocation26_spill] sm:$0xff]  ;;  %v3850_v24 = vld [vmem:[#allocation27_spill] sm:$0xff] }
 0x23e   :  { %926 = vmatpush1.msra.mxu0 %v2572_v25  ;;  %997 = vmatpush1.msra.mxu1 %v2574_v26  ;;  %v3851_v25 = vld [vmem:[#allocation28_spill] sm:$0xff]  ;;  %v3852_v26 = vld [vmem:[#allocation29_spill] sm:$0xff] }
 0x23f   :  { %927 = vmatprep.subr.mxu0 %v2583_v28  ;;  %998 = vmatprep.subr.mxu1 %v2585_v29  ;;  %v3853_v28 = vld [vmem:[#allocation30_spill] sm:$0xff]  ;;  %v3854_v29 = vld [vmem:[#allocation31_spill] sm:$0xff] }
 0x240   :  { %928 = vmatpush1.msra.mxu0 %v2589_v30  ;;  %999 = vmatpush1.msra.mxu1 %v2591_v31  ;;  %v3855_v30 = vmov 0.0   ;;  %v3856_v31 = vld [vmem:[#allocation32_spill] sm:$0xff] }
 0x241   :  { %929 = vmatprep.subr.mxu0 %v2595_v32  ;;  %1000 = vmatprep.subr.mxu1 %v2597_v33  ;;  %v3074_v32 = vld [vmem:[#allocation2 + $0x1e8] sm:$0xff]  ;;  %v3077_v33 = vld [vmem:[#allocation2 + $0x1f8] sm:$0xff] }
 0x242   :  { %930 = vmatpush1.msra.mxu0 %v2603_v34  ;;  %1001 = vmatpush1.msra.mxu1 %v2605_v35  ;;  %3857 = vst [vmem:[#allocation13_spill] sm:$0xff] %v3074_v32  ;;  %3858 = vst [vmem:[#allocation14_spill] sm:$0xff] %v3077_v33  ;;  %v3859_v35 = vld [vmem:[#allocation37_spill] sm:$0xff] }
 0x243   :  { %931 = vmatprep.subr.mxu0 %v2614_v37  ;;  %1002 = vmatprep.subr.mxu1 %v2616_v38 }
 0x244   :  { %932 = vmatpush1.msra.mxu0 %v2620_v39  ;;  %1003 = vmatpush1.msra.mxu1 %v2622_v40  ;;  %v3860_v40 = vld [vmem:[#allocation39_spill] sm:$0xff] }
 0x245   :  { %933 = vmatprep.subr.mxu0 %v2626_v41  ;;  %1004 = vmatprep.subr.mxu1 %v2628_v42 }
 0x246   :  { %934 = vmatpush1.msra.mxu0 %v2634_v43  ;;  %1005 = vmatpush1.msra.mxu1 %v2636_v44 }
 0x247   :  { %935 = vmatprep.subr.mxu0 %v2645_v46  ;;  %1006 = vmatprep.subr.mxu1 %v2647_v47 }
 0x248   :  { %936 = vmatpush1.msra.mxu0 %v2651_v48  ;;  %1007 = vmatpush1.msra.mxu1 %v2653_v49 }
 0x249   :  { %937 = vmatprep.subr.mxu0 %v2657_v50  ;;  %1008 = vmatprep.subr.mxu1 %v2659_v51 }
 0x24a   :  { %938 = vmatpush1.msra.mxu0 %v2665_v52  ;;  %1009 = vmatpush1.msra.mxu1 %v2667_v53 }
 0x24b   :  { %939 = vmatprep.subr.mxu0 %v2676_v55  ;;  %1010 = vmatprep.subr.mxu1 %v2678_v56 }
 0x24c   :  { %940 = vmatpush1.msra.mxu0 %v2682_v57  ;;  %1011 = vmatpush1.msra.mxu1 %v2684_v58 }
 0x24d   :  { %941 = vmatprep.subr.mxu0 %v3812_v62  ;;  %1012 = vmatprep.subr.mxu1 %v3813_v36 }
 0x24e   :  { %942 = vmatpush1.msra.mxu0 %v3814_v54  ;;  %1013 = vmatpush1.msra.mxu1 %v3839_v12 }
 0x24f   :  { %943 = vmatprep.subr.mxu0 %v3840_v13  ;;  %1014 = vmatprep.subr.mxu1 %v3841_v14 }
 0x250   :  { %944 = vmatpush1.msra.mxu0 %v3842_v15  ;;  %1015 = vmatpush1.msra.mxu1 %v3843_v16 }
 0x251   :  { %945 = vmatprep.subr.mxu0 %v3844_v17  ;;  %1016 = vmatprep.subr.mxu1 %v3845_v19 }
 0x252   :  { %946 = vmatpush1.msra.mxu0 %v3846_v20  ;;  %1017 = vmatpush1.msra.mxu1 %v3847_v21 }
 0x253   :  { %947 = vmatprep.subr.mxu0 %v3848_v22  ;;  %1018 = vmatprep.subr.mxu1 %v3849_v23 }
 0x254   :  { %948 = vmatpush1.msra.mxu0 %v3850_v24  ;;  %1019 = vmatpush1.msra.mxu1 %v3851_v25 }
 0x255   :  { %949 = vmatprep.subr.mxu0 %v3852_v26  ;;  %1020 = vmatprep.subr.mxu1 %v3853_v28 }
 0x256   :  { %950 = vmatpush1.msra.mxu0 %v3854_v29  ;;  %983 = vmatprep.mubr.f32.mxu0 %v3855_v30 }
 0x257   :  { %1021 = vmatpush1.msra.mxu1 %v3856_v31  ;;  %1054 = vmatprep.mubr.f32.mxu1 %v3855_v30 }
 0x258   :  { %1089 = vmatprep.subr.mxu0 %v3074_v32  ;;  %1160 = vmatprep.subr.mxu1 %v3077_v33 }
 0x2f7   :  { %v815_v34 = vpop.f32.mrf.mxu0  ;;  %v886_v0 = vpop.f32.mrf.mxu1 }
 0x2f8   :  { %v891_v37 = vadd.f32 %v815_v34, %v3859_v35  ;;  %v893_v8 = vadd.f32 %v886_v0, %v3862_v4  ;;  %v3091_v0 = vld [vmem:[#allocation2 + $0x1f0] sm:$0xff]  ;;  %v3109_v4 = vld [vmem:[#allocation2 + $0x1b8] sm:$0xff] }
 0x2f9   :  { %v817_v38 = vpop.f32.mrf.mxu0  ;;  %v888_v1 = vpop.f32.mrf.mxu1 }
 0x2fa   :  { %v2027_v39 = vmul.f32 -1.442695, %v891_v37  ;;  %v892_v45 = vadd.f32 %v817_v38, %v3860_v40  ;;  %v894_v2 = vadd.f32 %v888_v1, %v3861_v6  ;;  %v3100_v1 = vld [vmem:[#allocation2 + $0x1c0] sm:$0xff]  ;;  %v3103_v6 = vld [vmem:[#allocation2 + $0x1d0] sm:$0xff] }
 0x2fc   :  { %2192 = vpow2.f32 %v2027_v39  ;;  %v2028_v10 = vmul.f32 -1.442695, %v892_v45  ;;  %v2029_v3 = vmul.f32 -1.442695, %v894_v2  ;;  %v3088_v45 = vld [vmem:[#allocation2 + $0x1e0] sm:$0xff]  ;;  %v3106_v2 = vld [vmem:[#allocation2 + $0x1a8] sm:$0xff] }
 0x2fe   :  { %2194 = vpow2.f32 %v2028_v10  ;;  %v3094_v10 = vld [vmem:[#allocation2 + $0x1c8] sm:$0xff] }
 0x2ff   :  { %2196 = vtanh.f32 %v893_v8  ;;  %v3112_v8 = vld [vmem:[#allocation2 + $0x1a0] sm:$0xff] }
 0x300   :  { %2198 = vpow2.f32 %v2029_v3  ;;  %v3115_v3 = vld [vmem:[#allocation2 + $0x1b0] sm:$0xff] }
 0x309   :  { %v2193_v59 = vpop.eup %2192 }
 0x30a   :  { %v898_v63 = vadd.f32 1.0, %v2193_v59  ;;  %v3118_v59 = vld [vmem:[#allocation2 + $0x188] sm:$0xff] }
 0x30b   :  { %v2195_v18 = vpop.eup %2194 }
 0x30c   :  { %2200 = vrcp.f32 %v898_v63  ;;  %v904_v9 = vadd.f32 1.0, %v2195_v18  ;;  %v2197_v11 = vpop.eup %2196  ;;  %v3121_v63 = vld [vmem:[#allocation2 + $0x198] sm:$0xff]  ;;  %v3124_v18 = vld [vmem:[#allocation2 + $0x180] sm:$0xff] }
 0x30d   :  { %v2199_v27 = vpop.eup %2198 }
 0x30e   :  { %2202 = vrcp.f32 %v904_v9  ;;  %v911_v34 = vadd.f32 1.0, %v2199_v27  ;;  %v3127_v9 = vld [vmem:[#allocation2 + $0x190] sm:$0xff]  ;;  %v3133_v27 = vld [vmem:[#allocation2 + $0x178] sm:$0xff] }
 0x310   :  { %2204 = vrcp.f32 %v911_v34  ;;  %v3145_v34 = vld [vmem:[#allocation2 + $0x158] sm:$0xff] }
 0x311   :  { %3864 = vst [vmem:[#allocation11_spill] sm:$0xff] %v3145_v34 }
 0x319   :  { %v2201_v60 = vpop.eup %2200 }
 0x31a   :  { %v915_v5 = vmul.f32 %v2201_v60, %v2197_v11  ;;  %v3130_v11 = vld [vmem:[#allocation2 + $0x168] sm:$0xff]  ;;  %v3136_v60 = vld [vmem:[#allocation2 + $0x160] sm:$0xff] }
 0x31b   :  { %v2203_v61 = vpop.eup %2202 }
 0x31c   :  { %v914_v35 = vmul.f32 %v2203_v61, %v3007_v7  ;;  %v3097_v7 = vld [vmem:[#allocation2 + $0x1d8] sm:$0xff]  ;;  %v3142_v61 = vld [vmem:[#allocation2 + $0x148] sm:$0xff] }
 0x31d   :  { %v2205_v38 = vpop.eup %2204  ;;  %3863 = vst [vmem:[#allocation15_spill] sm:$0xff] %v3142_v61 }
 0x31e   :  { %v3085_v37 = vadd.f32 %v915_v5, %v914_v35  ;;  %v3139_v5 = vld [vmem:[#allocation2 + $0x170] sm:$0xff]  ;;  %v3148_v35 = vld [vmem:[#allocation2 + $0x140] sm:$0xff] }
 0x320   :  { %2206 = vtanh.f32 %v3085_v37 }
 0x32d   :  { %v2207_v39 = vpop.eup %2206 }
 0x32e   :  { %v918_v40 = vmul.f32 %v2207_v39, %v2205_v38  ;;  %v3151_v38 = vld [vmem:[#allocation2 + $0x150] sm:$0xff]  ;;  %v3154_v39 = vld [vmem:[#allocation2 + $0x128] sm:$0xff] }
 0x330   :  { %984 = vmatmul.mubr.f32.vlgmr.msra.gmra.mxu0 %v918_v40  ;;  %1055 = vmatmul.mubr.f32.vlgmr.msra.gmra.mxu1 %v918_v40  ;;  %v3157_v40 = vld [vmem:[#allocation2 + $0x138] sm:$0xff] }
 0x331   :  { %1090 = vmatpush1.msra.mxu0 %v3088_v45  ;;  %1161 = vmatpush1.msra.mxu1 %v3091_v0 }
 0x332   :  { %1091 = vmatprep.subr.mxu0 %v3094_v10  ;;  %1162 = vmatprep.subr.mxu1 %v3097_v7 }
 0x333   :  { %1092 = vmatpush1.msra.mxu0 %v3100_v1  ;;  %1163 = vmatpush1.msra.mxu1 %v3103_v6 }
 0x334   :  { %1093 = vmatprep.subr.mxu0 %v3106_v2  ;;  %1164 = vmatprep.subr.mxu1 %v3109_v4 }
 0x335   :  { %1094 = vmatpush1.msra.mxu0 %v3112_v8  ;;  %1165 = vmatpush1.msra.mxu1 %v3115_v3 }
 0x336   :  { %1095 = vmatprep.subr.mxu0 %v3118_v59  ;;  %1166 = vmatprep.subr.mxu1 %v3121_v63 }
 0x337   :  { %1096 = vmatpush1.msra.mxu0 %v3124_v18  ;;  %1167 = vmatpush1.msra.mxu1 %v3127_v9 }
 0x338   :  { %1097 = vmatprep.subr.mxu0 %v3130_v11  ;;  %1168 = vmatprep.subr.mxu1 %v3133_v27 }
 0x339   :  { %1098 = vmatpush1.msra.mxu0 %v3136_v60  ;;  %1169 = vmatpush1.msra.mxu1 %v3139_v5 }
 0x33a   :  { %1099 = vmatprep.subr.mxu0 %v3142_v61  ;;  %1170 = vmatprep.subr.mxu1 %v3145_v34  ;;  %v3160_v61 = vld [vmem:[#allocation2 + $0x120] sm:$0xff]  ;;  %v3163_v34 = vld [vmem:[#allocation2 + $0x130] sm:$0xff] }
 0x33b   :  { %1100 = vmatpush1.msra.mxu0 %v3148_v35  ;;  %1171 = vmatpush1.msra.mxu1 %v3151_v38 }
 0x33c   :  { %1101 = vmatprep.subr.mxu0 %v3154_v39  ;;  %1172 = vmatprep.subr.mxu1 %v3157_v40 }
 0x33d   :  { %1102 = vmatpush1.msra.mxu0 %v3160_v61  ;;  %1173 = vmatpush1.msra.mxu1 %v3163_v34 }
 0x33e   :  { %1103 = vmatprep.subr.mxu0 %v2626_v41  ;;  %1174 = vmatprep.subr.mxu1 %v2628_v42  ;;  %v3865_v42 = vld [vmem:[#allocation41_spill] sm:$0xff] }
 0x33f   :  { %1104 = vmatpush1.msra.mxu0 %v2634_v43  ;;  %1175 = vmatpush1.msra.mxu1 %v2636_v44 }
 0x340   :  { %1105 = vmatprep.subr.mxu0 %v2645_v46  ;;  %1176 = vmatprep.subr.mxu1 %v2647_v47  ;;  %v3866_v47 = vld [vmem:[#allocation43_spill] sm:$0xff] }
 0x341   :  { %1106 = vmatpush1.msra.mxu0 %v2651_v48  ;;  %1177 = vmatpush1.msra.mxu1 %v2653_v49 }
 0x342   :  { %1107 = vmatprep.subr.mxu0 %v2657_v50  ;;  %1178 = vmatprep.subr.mxu1 %v2659_v51 }
 0x343   :  { %1108 = vmatpush1.msra.mxu0 %v2665_v52  ;;  %1179 = vmatpush1.msra.mxu1 %v2667_v53  ;;  %v3867_v52 = vld [vmem:[#allocation44_spill] sm:$0xff] }
 0x344   :  { %1109 = vmatprep.subr.mxu0 %v2676_v55  ;;  %1180 = vmatprep.subr.mxu1 %v2678_v56  ;;  %v3868_v55 = vld [vmem:[#allocation42_spill] sm:$0xff] }
 0x345   :  { %1110 = vmatpush1.msra.mxu0 %v2682_v57  ;;  %1181 = vmatpush1.msra.mxu1 %v2684_v58 }
 0x346   :  { %1111 = vmatprep.subr.mxu0 %v3812_v62  ;;  %1182 = vmatprep.subr.mxu1 %v3813_v36 }
 0x347   :  { %1112 = vmatpush1.msra.mxu0 %v3814_v54  ;;  %1183 = vmatpush1.msra.mxu1 %v3839_v12 }
 0x348   :  { %1113 = vmatprep.subr.mxu0 %v3840_v13  ;;  %1184 = vmatprep.subr.mxu1 %v3841_v14 }
 0x349   :  { %1114 = vmatpush1.msra.mxu0 %v3842_v15  ;;  %1185 = vmatpush1.msra.mxu1 %v3843_v16 }
 0x34a   :  { %1115 = vmatprep.subr.mxu0 %v3844_v17  ;;  %1186 = vmatprep.subr.mxu1 %v3845_v19 }
 0x34b   :  { %1116 = vmatpush1.msra.mxu0 %v3846_v20  ;;  %1187 = vmatpush1.msra.mxu1 %v3847_v21 }
 0x34c   :  { %1117 = vmatprep.subr.mxu0 %v3848_v22  ;;  %1188 = vmatprep.subr.mxu1 %v3849_v23 }
 0x34d   :  { %1118 = vmatpush1.msra.mxu0 %v3850_v24  ;;  %1189 = vmatpush1.msra.mxu1 %v3851_v25  ;;  %v3869_v24 = vld [vmem:[#allocation15_spill] sm:$0xff] }
 0x34e   :  { %1119 = vmatprep.subr.mxu0 %v3852_v26  ;;  %1190 = vmatprep.subr.mxu1 %v3853_v28  ;;  %v3870_v25 = vld [vmem:[#allocation11_spill] sm:$0xff]  ;;  %v3240_v26 = vld [vmem:[#allocation2 + $0x108] sm:$0xff]  ;;  %v3243_v28 = vld [vmem:[#allocation2 + $0x118] sm:$0xff] }
 0x34f   :  { %1120 = vmatpush1.msra.mxu0 %v3854_v29  ;;  %1153 = vmatprep.mubr.f32.mxu0 %v3855_v30  ;;  %v3246_v29 = vld [vmem:[#allocation2 + $0x100] sm:$0xff] }
 0x350   :  { %1191 = vmatpush1.msra.mxu1 %v3856_v31  ;;  %1224 = vmatprep.mubr.f32.mxu1 %v3855_v30  ;;  %v3249_v31 = vld [vmem:[#allocation2 + $0x110] sm:$0xff] }
 0x351   :  { %1259 = vmatprep.subr.mxu0 %v3074_v32  ;;  %1330 = vmatprep.subr.mxu1 %v3077_v33 }
 0x3f0   :  { %v985_v41 = vpop.f32.mrf.mxu0  ;;  %v1056_v49 = vpop.f32.mrf.mxu1 }
 0x3f1   :  { %v1061_v43 = vadd.f32 %v985_v41, %v3865_v42  ;;  %v1063_v56 = vadd.f32 %v1056_v49, %v3868_v55  ;;  %v3255_v41 = vld [vmem:[#allocation2 + $0xf8] sm:$0xff]  ;;  %v3258_v42 = vld [vmem:[#allocation2 + $0xe0] sm:$0xff]  ;;  %v3276_v49 = vld [vmem:[#allocation2 + $0xa8] sm:$0xff] }
 0x3f2   :  { %v987_v44 = vpop.f32.mrf.mxu0  ;;  %v1058_v51 = vpop.f32.mrf.mxu1  ;;  %v3291_v55 = vld [vmem:[#allocation2 + $0x98] sm:$0xff] }
 0x3f3   :  { %v2030_v46 = vmul.f32 -1.442695, %v1061_v43  ;;  %v1062_v48 = vadd.f32 %v987_v44, %v3866_v47  ;;  %v1064_v53 = vadd.f32 %v1058_v51, %v3867_v52  ;;  %v3261_v43 = vld [vmem:[#allocation2 + $0xf0] sm:$0xff]  ;;  %v3264_v44 = vld [vmem:[#allocation2 + $0xc8] sm:$0xff]  ;;  %v3270_v47 = vld [vmem:[#allocation2 + $0xc0] sm:$0xff] }
 0x3f4   :  { %v3282_v51 = vld [vmem:[#allocation2 + $0xa0] sm:$0xff]  ;;  %v3285_v52 = vld [vmem:[#allocation2 + $0xb0] sm:$0xff] }
 0x3f5   :  { %2208 = vpow2.f32 %v2030_v46  ;;  %v2031_v50 = vmul.f32 -1.442695, %v1062_v48  ;;  %v2032_v57 = vmul.f32 -1.442695, %v1064_v53  ;;  %v3267_v46 = vld [vmem:[#allocation2 + $0xd8] sm:$0xff]  ;;  %v3273_v48 = vld [vmem:[#allocation2 + $0xd0] sm:$0xff] }
 0x3f6   :  { %v3288_v53 = vld [vmem:[#allocation2 + $0x88] sm:$0xff] }
 0x3f7   :  { %2210 = vpow2.f32 %v2031_v50  ;;  %v3279_v50 = vld [vmem:[#allocation2 + $0xb8] sm:$0xff] }
 0x3f8   :  { %2212 = vtanh.f32 %v1063_v56  ;;  %v3294_v56 = vld [vmem:[#allocation2 + $0x80] sm:$0xff] }
 0x3f9   :  { %2214 = vpow2.f32 %v2032_v57  ;;  %v3297_v57 = vld [vmem:[#allocation2 + $0x90] sm:$0xff] }
 0x3fa   :  { %3871 = vst [vmem:[#allocation12_spill] sm:$0xff] %v3297_v57 }
 0x402   :  { %v2209_v58 = vpop.eup %2208 }
 0x403   :  { %v1068_v62 = vadd.f32 1.0, %v2209_v58  ;;  %v3300_v58 = vld [vmem:[#allocation2 + $0x68] sm:$0xff] }
 0x404   :  { %v2211_v36 = vpop.eup %2210  ;;  %3872 = vst [vmem:[#allocation33_spill] sm:$0xff] %v3300_v58 }
 0x405   :  { %2216 = vrcp.f32 %v1068_v62  ;;  %v1074_v54 = vadd.f32 1.0, %v2211_v36  ;;  %v2213_v12 = vpop.eup %2212  ;;  %v3303_v62 = vld [vmem:[#allocation2 + $0x78] sm:$0xff]  ;;  %v3306_v36 = vld [vmem:[#allocation2 + $0x60] sm:$0xff] }
 0x406   :  { %v2215_v13 = vpop.eup %2214  ;;  %3873 = vst [vmem:[#allocation35_spill] sm:$0xff] %v3303_v62  ;;  %3874 = vst [vmem:[#allocation36_spill] sm:$0xff] %v3306_v36 }
 0x407   :  { %2218 = vrcp.f32 %v1074_v54  ;;  %v1081_v17 = vadd.f32 1.0, %v2215_v13  ;;  %v3309_v54 = vld [vmem:[#allocation2 + $0x70] sm:$0xff]  ;;  %v3315_v13 = vld [vmem:[#allocation2 + $0x58] sm:$0xff] }
 0x408   :  { %3875 = vst [vmem:[#allocation34_spill] sm:$0xff] %v3309_v54  ;;  %3877 = vst [vmem:[#allocation17_spill] sm:$0xff] %v3315_v13 }
 0x409   :  { %2220 = vrcp.f32 %v1081_v17  ;;  %v3327_v17 = vld [vmem:[#allocation2 + $0x38] sm:$0xff] }
 0x40a   :  { %3881 = vst [vmem:[#allocation21_spill] sm:$0xff] %v3327_v17 }
 0x412   :  { %v2217_v14 = vpop.eup %2216 }
 0x413   :  { %v1085_v15 = vmul.f32 %v2217_v14, %v2213_v12  ;;  %v3312_v12 = vld [vmem:[#allocation2 + $0x48] sm:$0xff]  ;;  %v3318_v14 = vld [vmem:[#allocation2 + $0x40] sm:$0xff] }
 0x414   :  { %v2219_v16 = vpop.eup %2218  ;;  %3876 = vst [vmem:[#allocation16_spill] sm:$0xff] %v3312_v12  ;;  %3878 = vst [vmem:[#allocation18_spill] sm:$0xff] %v3318_v14 }
 0x415   :  { %v1084_v19 = vmul.f32 %v2219_v16, %v3085_v37  ;;  %v3252_v37 = vld [vmem:[#allocation2 + $0xe8] sm:$0xff] }
 0x416   :  { %v2221_v21 = vpop.eup %2220  ;;  %v3324_v16 = vld [vmem:[#allocation2 + $0x28] sm:$0xff] }
 0x417   :  { %v3211_v20 = vadd.f32 %v1085_v15, %v1084_v19  ;;  %v3321_v15 = vld [vmem:[#allocation2 + $0x50] sm:$0xff]  ;;  %3880 = vst [vmem:[#allocation20_spill] sm:$0xff] %v3324_v16  ;;  %v3330_v19 = vld [vmem:[#allocation2 + $0x20] sm:$0xff] }
 0x418   :  { %3879 = vst [vmem:[#allocation19_spill] sm:$0xff] %v3321_v15  ;;  %3882 = vst [vmem:[#allocation22_spill] sm:$0xff] %v3330_v19 }
 0x419   :  { %2222 = vtanh.f32 %v3211_v20 }
 0x426   :  { %v2223_v22 = vpop.eup %2222 }
 0x427   :  { %v1088_v23 = vmul.f32 %v2223_v22, %v2221_v21  ;;  %v3333_v21 = vld [vmem:[#allocation2 + $0x30] sm:$0xff]  ;;  %v3336_v22 = vld [vmem:[#allocation2 + $0x8] sm:$0xff] }
 0x428   :  { %3883 = vst [vmem:[#allocation23_spill] sm:$0xff] %v3333_v21  ;;  %3884 = vst [vmem:[#allocation24_spill] sm:$0xff] %v3336_v22 }
 0x429   :  { %1154 = vmatmul.mubr.f32.vlgmr.msra.gmra.mxu0 %v1088_v23  ;;  %1225 = vmatmul.mubr.f32.vlgmr.msra.gmra.mxu1 %v1088_v23  ;;  %v3339_v23 = vld [vmem:[#allocation2 + $0x18] sm:$0xff] }
 0x42a   :  { %1260 = vmatpush1.msra.mxu0 %v3088_v45  ;;  %1331 = vmatpush1.msra.mxu1 %v3091_v0  ;;  %3885 = vst [vmem:[#allocation25_spill] sm:$0xff] %v3339_v23 }
 0x42b   :  { %1261 = vmatprep.subr.mxu0 %v3094_v10  ;;  %1332 = vmatprep.subr.mxu1 %v3097_v7 }
 0x42c   :  { %1262 = vmatpush1.msra.mxu0 %v3100_v1  ;;  %1333 = vmatpush1.msra.mxu1 %v3103_v6 }
 0x42d   :  { %1263 = vmatprep.subr.mxu0 %v3106_v2  ;;  %1334 = vmatprep.subr.mxu1 %v3109_v4 }
 0x42e   :  { %1264 = vmatpush1.msra.mxu0 %v3112_v8  ;;  %1335 = vmatpush1.msra.mxu1 %v3115_v3 }
 0x42f   :  { %1265 = vmatprep.subr.mxu0 %v3118_v59  ;;  %1336 = vmatprep.subr.mxu1 %v3121_v63 }
 0x430   :  { %1266 = vmatpush1.msra.mxu0 %v3124_v18  ;;  %1337 = vmatpush1.msra.mxu1 %v3127_v9 }
 0x431   :  { %1267 = vmatprep.subr.mxu0 %v3130_v11  ;;  %1338 = vmatprep.subr.mxu1 %v3133_v27 }
 0x432   :  { %1268 = vmatpush1.msra.mxu0 %v3136_v60  ;;  %1339 = vmatpush1.msra.mxu1 %v3139_v5 }
 0x433   :  { %1269 = vmatprep.subr.mxu0 %v3869_v24  ;;  %1340 = vmatprep.subr.mxu1 %v3870_v25 }
 0x434   :  { %1270 = vmatpush1.msra.mxu0 %v3148_v35  ;;  %1341 = vmatpush1.msra.mxu1 %v3151_v38 }
 0x435   :  { %1271 = vmatprep.subr.mxu0 %v3154_v39  ;;  %1342 = vmatprep.subr.mxu1 %v3157_v40 }
 0x436   :  { %1272 = vmatpush1.msra.mxu0 %v3160_v61  ;;  %1343 = vmatpush1.msra.mxu1 %v3163_v34 }
 0x437   :  { %1273 = vmatprep.subr.mxu0 %v3240_v26  ;;  %1344 = vmatprep.subr.mxu1 %v3243_v28 }
 0x438   :  { %1274 = vmatpush1.msra.mxu0 %v3246_v29  ;;  %1345 = vmatpush1.msra.mxu1 %v3249_v31 }
 0x439   :  { %1275 = vmatprep.subr.mxu0 %v3252_v37  ;;  %1346 = vmatprep.subr.mxu1 %v3255_v41 }
 0x43a   :  { %1276 = vmatpush1.msra.mxu0 %v3258_v42  ;;  %1347 = vmatpush1.msra.mxu1 %v3261_v43 }
 0x43b   :  { %1277 = vmatprep.subr.mxu0 %v3264_v44  ;;  %1348 = vmatprep.subr.mxu1 %v3267_v46 }
 0x43c   :  { %1278 = vmatpush1.msra.mxu0 %v3270_v47  ;;  %1349 = vmatpush1.msra.mxu1 %v3273_v48 }
 0x43d   :  { %1279 = vmatprep.subr.mxu0 %v3276_v49  ;;  %1350 = vmatprep.subr.mxu1 %v3279_v50 }
 0x43e   :  { %1280 = vmatpush1.msra.mxu0 %v3282_v51  ;;  %1351 = vmatpush1.msra.mxu1 %v3285_v52 }
 0x43f   :  { %1281 = vmatprep.subr.mxu0 %v3288_v53  ;;  %1352 = vmatprep.subr.mxu1 %v3291_v55 }
 0x440   :  { %1282 = vmatpush1.msra.mxu0 %v3294_v56  ;;  %1353 = vmatpush1.msra.mxu1 %v3297_v57 }
 0x441   :  { %1283 = vmatprep.subr.mxu0 %v3300_v58  ;;  %1354 = vmatprep.subr.mxu1 %v3303_v62  ;;  %v3891_v62 = vld [vmem:[#allocation46_spill] sm:$0xff] }
 0x442   :  { %1284 = vmatpush1.msra.mxu0 %v3306_v36  ;;  %1355 = vmatpush1.msra.mxu1 %v3309_v54  ;;  %v3890_v36 = vld [vmem:[#allocation48_spill] sm:$0xff] }
 0x443   :  { %1285 = vmatprep.subr.mxu0 %v3312_v12  ;;  %1356 = vmatprep.subr.mxu1 %v3315_v13 }
 0x444   :  { %1286 = vmatpush1.msra.mxu0 %v3318_v14  ;;  %1357 = vmatpush1.msra.mxu1 %v3321_v15  ;;  %v3889_v14 = vld [vmem:[#allocation47_spill] sm:$0xff] }
 0x445   :  { %1287 = vmatprep.subr.mxu0 %v3324_v16  ;;  %1358 = vmatprep.subr.mxu1 %v3327_v17  ;;  %v3342_v16 = vld [vmem:[#allocation2] sm:$0xff]  ;;  %v3346_v17 = vld [vmem:[#allocation2 + $0x10] sm:$0xff] }
 0x446   :  { %1288 = vmatpush1.msra.mxu0 %v3330_v19  ;;  %1359 = vmatpush1.msra.mxu1 %v3333_v21  ;;  %3886 = vst [vmem:[#allocation26_spill] sm:$0xff] %v3342_v16  ;;  %3887 = vst [vmem:[#allocation27_spill] sm:$0xff] %v3346_v17  ;;  %v3888_v21 = vld [vmem:[#allocation45_spill] sm:$0xff] }
 0x447   :  { %1289 = vmatprep.subr.mxu0 %v3336_v22  ;;  %1360 = vmatprep.subr.mxu1 %v3339_v23 }
 0x448   :  { %1290 = vmatpush1.msra.mxu0 %v3342_v16  ;;  %1323 = vmatprep.mubr.f32.mxu0 %v3855_v30 }
 0x449   :  { %1361 = vmatpush1.msra.mxu1 %v3346_v17  ;;  %1394 = vmatprep.mubr.f32.mxu1 %v3855_v30 }
 0x44a   :  { %1429 = vmatprep.subr.mxu0 %v3074_v32  ;;  %1500 = vmatprep.subr.mxu1 %v3077_v33 }
 0x4e9   :  { %v1155_v22 = vpop.f32.mrf.mxu0  ;;  %v1226_v16 = vpop.f32.mrf.mxu1 }
 0x4ea   :  { %v1231_v19 = vadd.f32 %v1155_v22, %v3888_v21  ;;  %v1233_v30 = vadd.f32 %v1226_v16, %v3891_v62  ;;  %v3897_v16 = vld [vmem:[#allocation16_spill] sm:$0xff] }
 0x4eb   :  { %v1157_v23 = vpop.f32.mrf.mxu0  ;;  %v1228_v54 = vpop.f32.mrf.mxu1 }
 0x4ec   :  { %v2033_v15 = vmul.f32 -1.442695, %v1231_v19  ;;  %v1232_v13 = vadd.f32 %v1157_v23, %v3889_v14  ;;  %v1234_v17 = vadd.f32 %v1228_v54, %v3890_v36  ;;  %v3896_v54 = vld [vmem:[#allocation34_spill] sm:$0xff] }
 0x4ee   :  { %2224 = vpow2.f32 %v2033_v15  ;;  %v2034_v12 = vmul.f32 -1.442695, %v1232_v13  ;;  %v2035_v58 = vmul.f32 -1.442695, %v1234_v17  ;;  %v3898_v17 = vld [vmem:[#allocation17_spill] sm:$0xff] }
 0x4f0   :  { %2226 = vpow2.f32 %v2034_v12 }
 0x4f1   :  { %2228 = vtanh.f32 %v1233_v30 }
 0x4f2   :  { %2230 = vpow2.f32 %v2035_v58  ;;  %v3895_v58 = vld [vmem:[#allocation36_spill] sm:$0xff] }
 0x4fb   :  { %v2225_v32 = vpop.eup %2224 }
 0x4fc   :  { %v1238_v57 = vadd.f32 1.0, %v2225_v32 }
 0x4fd   :  { %v2227_v33 = vpop.eup %2226 }
 0x4fe   :  { %2232 = vrcp.f32 %v1238_v57  ;;  %v1244_v21 = vadd.f32 1.0, %v2227_v33  ;;  %v2229_v19 = vpop.eup %2228  ;;  %v3892_v33 = vld [vmem:[#allocation12_spill] sm:$0xff]  ;;  %v3894_v57 = vld [vmem:[#allocation35_spill] sm:$0xff] }
 0x4ff   :  { %v2231_v14 = vpop.eup %2230 }
 0x500   :  { %2234 = vrcp.f32 %v1244_v21  ;;  %v1251_v12 = vadd.f32 1.0, %v2231_v14  ;;  %v3899_v21 = vld [vmem:[#allocation18_spill] sm:$0xff]  ;;  %v3901_v14 = vld [vmem:[#allocation20_spill] sm:$0xff] }
 0x502   :  { %2236 = vrcp.f32 %v1251_v12  ;;  %v3905_v12 = vld [vmem:[#allocation24_spill] sm:$0xff] }
 0x50b   :  { %v2233_v15 = vpop.eup %2232 }
 0x50c   :  { %v1255_v22 = vmul.f32 %v2233_v15, %v2229_v19  ;;  %v3900_v19 = vld [vmem:[#allocation19_spill] sm:$0xff]  ;;  %v3902_v15 = vld [vmem:[#allocation21_spill] sm:$0xff] }
 0x50d   :  { %v2235_v13 = vpop.eup %2234 }
 0x50e   :  { %v1254_v23 = vmul.f32 %v2235_v13, %v3211_v20  ;;  %v3893_v20 = vld [vmem:[#allocation33_spill] sm:$0xff]  ;;  %v3904_v13 = vld [vmem:[#allocation23_spill] sm:$0xff] }
 0x50f   :  { %v2237_v32 = vpop.eup %2236 }
 0x510   :  { %v3357_v36 = vadd.f32 %v1255_v22, %v1254_v23  ;;  %v3903_v22 = vld [vmem:[#allocation22_spill] sm:$0xff]  ;;  %v3906_v23 = vld [vmem:[#allocation25_spill] sm:$0xff] }
 0x512   :  { %2238 = vtanh.f32 %v3357_v36 }
 0x51f   :  { %v2239_v30 = vpop.eup %2238 }
 0x520   :  { %v1258_v62 = vmul.f32 %v2239_v30, %v2237_v32  ;;  %v3907_v32 = vld [vmem:[#allocation26_spill] sm:$0xff]  ;;  %v3908_v30 = vmov 0.0  }
 0x522   :  { %1324 = vmatmul.mubr.f32.vlgmr.msra.gmra.mxu0 %v1258_v62  ;;  %1395 = vmatmul.mubr.f32.vlgmr.msra.gmra.mxu1 %v1258_v62  ;;  %v3909_v62 = vld [vmem:[#allocation27_spill] sm:$0xff] }
 0x523   :  { %1430 = vmatpush1.msra.mxu0 %v3088_v45  ;;  %1501 = vmatpush1.msra.mxu1 %v3091_v0 }
 0x524   :  { %1431 = vmatprep.subr.mxu0 %v3094_v10  ;;  %1502 = vmatprep.subr.mxu1 %v3097_v7 }
 0x525   :  { %1432 = vmatpush1.msra.mxu0 %v3100_v1  ;;  %1503 = vmatpush1.msra.mxu1 %v3103_v6 }
 0x526   :  { %1433 = vmatprep.subr.mxu0 %v3106_v2  ;;  %1504 = vmatprep.subr.mxu1 %v3109_v4 }
 0x527   :  { %1434 = vmatpush1.msra.mxu0 %v3112_v8  ;;  %1505 = vmatpush1.msra.mxu1 %v3115_v3 }
 0x528   :  { %1435 = vmatprep.subr.mxu0 %v3118_v59  ;;  %1506 = vmatprep.subr.mxu1 %v3121_v63 }
 0x529   :  { %1436 = vmatpush1.msra.mxu0 %v3124_v18  ;;  %1507 = vmatpush1.msra.mxu1 %v3127_v9 }
 0x52a   :  { %1437 = vmatprep.subr.mxu0 %v3130_v11  ;;  %1508 = vmatprep.subr.mxu1 %v3133_v27 }
 0x52b   :  { %1438 = vmatpush1.msra.mxu0 %v3136_v60  ;;  %1509 = vmatpush1.msra.mxu1 %v3139_v5 }
 0x52c   :  { %1439 = vmatprep.subr.mxu0 %v3869_v24  ;;  %1510 = vmatprep.subr.mxu1 %v3870_v25 }
 0x52d   :  { %1440 = vmatpush1.msra.mxu0 %v3148_v35  ;;  %1511 = vmatpush1.msra.mxu1 %v3151_v38 }
 0x52e   :  { %1441 = vmatprep.subr.mxu0 %v3154_v39  ;;  %1512 = vmatprep.subr.mxu1 %v3157_v40 }
 0x52f   :  { %1442 = vmatpush1.msra.mxu0 %v3160_v61  ;;  %1513 = vmatpush1.msra.mxu1 %v3163_v34 }
 0x530   :  { %1443 = vmatprep.subr.mxu0 %v3240_v26  ;;  %1514 = vmatprep.subr.mxu1 %v3243_v28 }
 0x531   :  { %1444 = vmatpush1.msra.mxu0 %v3246_v29  ;;  %1515 = vmatpush1.msra.mxu1 %v3249_v31 }
 0x532   :  { %1445 = vmatprep.subr.mxu0 %v3252_v37  ;;  %1516 = vmatprep.subr.mxu1 %v3255_v41 }
 0x533   :  { %1446 = vmatpush1.msra.mxu0 %v3258_v42  ;;  %1517 = vmatpush1.msra.mxu1 %v3261_v43 }
 0x534   :  { %1447 = vmatprep.subr.mxu0 %v3264_v44  ;;  %1518 = vmatprep.subr.mxu1 %v3267_v46 }
 0x535   :  { %1448 = vmatpush1.msra.mxu0 %v3270_v47  ;;  %1519 = vmatpush1.msra.mxu1 %v3273_v48 }
 0x536   :  { %1449 = vmatprep.subr.mxu0 %v3276_v49  ;;  %1520 = vmatprep.subr.mxu1 %v3279_v50 }
 0x537   :  { %1450 = vmatpush1.msra.mxu0 %v3282_v51  ;;  %1521 = vmatpush1.msra.mxu1 %v3285_v52 }
 0x538   :  { %1451 = vmatprep.subr.mxu0 %v3288_v53  ;;  %1522 = vmatprep.subr.mxu1 %v3291_v55 }
 0x539   :  { %1452 = vmatpush1.msra.mxu0 %v3294_v56  ;;  %1523 = vmatpush1.msra.mxu1 %v3892_v33 }
 0x53a   :  { %1453 = vmatprep.subr.mxu0 %v3893_v20  ;;  %1524 = vmatprep.subr.mxu1 %v3894_v57  ;;  %v3915_v57 = vld [vmem:[#allocation50_spill] sm:$0xff] }
 0x53b   :  { %1454 = vmatpush1.msra.mxu0 %v3895_v58  ;;  %1525 = vmatpush1.msra.mxu1 %v3896_v54  ;;  %v3914_v58 = vld [vmem:[#allocation52_spill] sm:$0xff] }
 0x53c   :  { %1455 = vmatprep.subr.mxu0 %v3897_v16  ;;  %1526 = vmatprep.subr.mxu1 %v3898_v17 }
 0x53d   :  { %1456 = vmatpush1.msra.mxu0 %v3899_v21  ;;  %1527 = vmatpush1.msra.mxu1 %v3900_v19  ;;  %v3910_v19 = vld [vmem:[#allocation13_spill] sm:$0xff] }
 0x53e   :  { %1457 = vmatprep.subr.mxu0 %v3901_v14  ;;  %1528 = vmatprep.subr.mxu1 %v3902_v15  ;;  %v3911_v14 = vld [vmem:[#allocation14_spill] sm:$0xff] }
 0x53f   :  { %1458 = vmatpush1.msra.mxu0 %v3903_v22  ;;  %1529 = vmatpush1.msra.mxu1 %v3904_v13  ;;  %v3912_v22 = vld [vmem:[#allocation49_spill] sm:$0xff] }
 0x540   :  { %1459 = vmatprep.subr.mxu0 %v3905_v12  ;;  %1530 = vmatprep.subr.mxu1 %v3906_v23  ;;  %v3913_v12 = vld [vmem:[#allocation51_spill] sm:$0xff] }
 0x541   :  { %1460 = vmatpush1.msra.mxu0 %v3907_v32  ;;  %1493 = vmatprep.mubr.f32.mxu0 %v3908_v30 }
 0x542   :  { %1531 = vmatpush1.msra.mxu1 %v3909_v62  ;;  %1564 = vmatprep.mubr.f32.mxu1 %v3908_v30 }
 0x543   :  { %1599 = vmatprep.subr.mxu0 %v3910_v19  ;;  %1670 = vmatprep.subr.mxu1 %v3911_v14 }
 0x5e2   :  { %v1325_v15 = vpop.f32.mrf.mxu0  ;;  %v1396_v23 = vpop.f32.mrf.mxu1 }
 0x5e3   :  { %v1401_v21 = vadd.f32 %v1325_v15, %v3912_v22  ;;  %v1403_v30 = vadd.f32 %v1396_v23, %v3915_v57 }
 0x5e4   :  { %v1327_v13 = vpop.f32.mrf.mxu0  ;;  %v1398_v54 = vpop.f32.mrf.mxu1 }
 0x5e5   :  { %v2036_v17 = vmul.f32 -1.442695, %v1401_v21  ;;  %v1402_v16 = vadd.f32 %v1327_v13, %v3913_v12  ;;  %v1404_v62 = vadd.f32 %v1398_v54, %v3914_v58 }
 0x5e7   :  { %2240 = vpow2.f32 %v2036_v17  ;;  %v2037_v32 = vmul.f32 -1.442695, %v1402_v16  ;;  %v2038_v20 = vmul.f32 -1.442695, %v1404_v62  ;;  %v1785_v62 = vld [vmem:[%s3664_s6 + $0x70] sm:$0xff] }
 0x5e9   :  { %2242 = vpow2.f32 %v2037_v32 }
 0x5ea   :  { %2244 = vtanh.f32 %v1403_v30  ;;  %v1786_v30 = vld [vmem:[%s3664_s6 + $0x78] sm:$0xff] }
 0x5eb   :  { %2246 = vpow2.f32 %v2038_v20 }
 0x5f4   :  { %v2241_v19 = vpop.eup %2240 }
 0x5f5   :  { %v1408_v33 = vadd.f32 1.0, %v2241_v19  ;;  %v1784_v19 = vld [vmem:[%s3664_s6 + $0x68] sm:$0xff] }
 0x5f6   :  { %v2243_v14 = vpop.eup %2242 }
 0x5f7   :  { %2248 = vrcp.f32 %v1408_v33  ;;  %v1414_v15 = vadd.f32 1.0, %v2243_v14  ;;  %v2245_v21 = vpop.eup %2244  ;;  %v1783_v14 = vld [vmem:[%s3664_s6 + $0x60] sm:$0xff] }
 0x5f8   :  { %v2247_v22 = vpop.eup %2246 }
 0x5f9   :  { %2250 = vrcp.f32 %v1414_v15  ;;  %v1421_v12 = vadd.f32 1.0, %v2247_v22  ;;  %v1782_v15 = vld [vmem:[%s3664_s6 + $0x58] sm:$0xff]  ;;  %v1780_v22 = vld [vmem:[%s3664_s6 + $0x48] sm:$0xff] }
 0x5fb   :  { %2252 = vrcp.f32 %v1421_v12  ;;  %v1776_v12 = vld [vmem:[%s3664_s6 + $0x28] sm:$0xff] }
 0x604   :  { %v2249_v17 = vpop.eup %2248 }
 0x605   :  { %v1425_v13 = vmul.f32 %v2249_v17, %v2245_v21  ;;  %v1781_v21 = vld [vmem:[%s3664_s6 + $0x50] sm:$0xff]  ;;  %v1779_v17 = vld [vmem:[%s3664_s6 + $0x40] sm:$0xff] }
 0x606   :  { %v2251_v16 = vpop.eup %2250 }
 0x607   :  { %v1424_v32 = vmul.f32 %v2251_v16, %v3357_v36  ;;  %v1777_v16 = vld [vmem:[%s3664_s6 + $0x30] sm:$0xff] }
 0x608   :  { %v2253_v57 = vpop.eup %2252 }
 0x609   :  { %v3431_v58 = vadd.f32 %v1425_v13, %v1424_v32  ;;  %v1778_v13 = vld [vmem:[%s3664_s6 + $0x38] sm:$0xff]  ;;  %v1775_v32 = vld [vmem:[%s3664_s6 + $0x20] sm:$0xff] }
 0x60b   :  { %2254 = vtanh.f32 %v3431_v58 }
 0x618   :  { %v2255_v54 = vpop.eup %2254 }
 0x619   :  { %v1428_v23 = vmul.f32 %v2255_v54, %v2253_v57  ;;  %v1773_v57 = vld [vmem:[%s3664_s6 + $0x10] sm:$0xff]  ;;  %v1772_v54 = vld [vmem:[%s3664_s6 + $0x8] sm:$0xff] }
 0x61b   :  { %1494 = vmatmul.mubr.f32.vlgmr.msra.gmra.mxu0 %v1428_v23  ;;  %1565 = vmatmul.mubr.f32.vlgmr.msra.gmra.mxu1 %v1428_v23  ;;  %v1771_v23 = vld [vmem:[%s3664_s6] sm:$0xff] }
 0x61c   :  { %1600 = vmatpush1.msra.mxu0 %v3088_v45  ;;  %1671 = vmatpush1.msra.mxu1 %v3091_v0  ;;  %v3916_v45 = vld [vmem:[#allocation12_spill] sm:$0xff]  ;;  %v3917_v0 = vld [vmem:[#allocation33_spill] sm:$0xff] }
 0x61d   :  { %1601 = vmatprep.subr.mxu0 %v3094_v10  ;;  %1672 = vmatprep.subr.mxu1 %v3097_v7  ;;  %v3918_v10 = vld [vmem:[#allocation35_spill] sm:$0xff]  ;;  %v3919_v7 = vld [vmem:[#allocation36_spill] sm:$0xff] }
 0x61e   :  { %1602 = vmatpush1.msra.mxu0 %v3100_v1  ;;  %1673 = vmatpush1.msra.mxu1 %v3103_v6  ;;  %v3920_v1 = vld [vmem:[#allocation34_spill] sm:$0xff]  ;;  %v3921_v6 = vld [vmem:[#allocation16_spill] sm:$0xff] }
 0x61f   :  { %1603 = vmatprep.subr.mxu0 %v3106_v2  ;;  %1674 = vmatprep.subr.mxu1 %v3109_v4  ;;  %v3922_v2 = vld [vmem:[#allocation17_spill] sm:$0xff]  ;;  %v3923_v4 = vld [vmem:[#allocation18_spill] sm:$0xff] }
 0x620   :  { %1604 = vmatpush1.msra.mxu0 %v3112_v8  ;;  %1675 = vmatpush1.msra.mxu1 %v3115_v3  ;;  %v3924_v8 = vld [vmem:[#allocation19_spill] sm:$0xff]  ;;  %v3925_v3 = vld [vmem:[#allocation20_spill] sm:$0xff] }
 0x621   :  { %1605 = vmatprep.subr.mxu0 %v3118_v59  ;;  %1676 = vmatprep.subr.mxu1 %v3121_v63  ;;  %v3926_v59 = vld [vmem:[#allocation21_spill] sm:$0xff]  ;;  %v3927_v63 = vld [vmem:[#allocation22_spill] sm:$0xff] }
 0x622   :  { %1606 = vmatpush1.msra.mxu0 %v3124_v18  ;;  %1677 = vmatpush1.msra.mxu1 %v3127_v9  ;;  %v3928_v18 = vld [vmem:[#allocation23_spill] sm:$0xff]  ;;  %v3929_v9 = vld [vmem:[#allocation24_spill] sm:$0xff] }
 0x623   :  { %1607 = vmatprep.subr.mxu0 %v3130_v11  ;;  %1678 = vmatprep.subr.mxu1 %v3133_v27  ;;  %v3930_v11 = vld [vmem:[#allocation25_spill] sm:$0xff]  ;;  %v3931_v27 = vld [vmem:[#allocation26_spill] sm:$0xff] }
 0x624   :  { %1608 = vmatpush1.msra.mxu0 %v3136_v60  ;;  %1679 = vmatpush1.msra.mxu1 %v3139_v5  ;;  %v3932_v60 = vmov 0.0   ;;  %v3933_v5 = vld [vmem:[#allocation27_spill] sm:$0xff] }
 0x625   :  { %1609 = vmatprep.subr.mxu0 %v3869_v24  ;;  %1680 = vmatprep.subr.mxu1 %v3870_v25 }
 0x626   :  { %1610 = vmatpush1.msra.mxu0 %v3148_v35  ;;  %1681 = vmatpush1.msra.mxu1 %v3151_v38 }
 0x627   :  { %1611 = vmatprep.subr.mxu0 %v3154_v39  ;;  %1682 = vmatprep.subr.mxu1 %v3157_v40  ;;  %v3935_v40 = vld [vmem:[#allocation55_spill] sm:$0xff] }
 0x628   :  { %1612 = vmatpush1.msra.mxu0 %v3160_v61  ;;  %1683 = vmatpush1.msra.mxu1 %v3163_v34  ;;  %v3934_v34 = vld [vmem:[#allocation53_spill] sm:$0xff] }
 0x629   :  { %1613 = vmatprep.subr.mxu0 %v3240_v26  ;;  %1684 = vmatprep.subr.mxu1 %v3243_v28 }
 0x62a   :  { %1614 = vmatpush1.msra.mxu0 %v3246_v29  ;;  %1685 = vmatpush1.msra.mxu1 %v3249_v31  ;;  %v3936_v29 = vld [vmem:[#allocation56_spill] sm:$0xff] }
 0x62b   :  { %1615 = vmatprep.subr.mxu0 %v3252_v37  ;;  %1686 = vmatprep.subr.mxu1 %v3255_v41  ;;  %v3937_v37 = vld [vmem:[#allocation54_spill] sm:$0xff] }
 0x62c   :  { %1616 = vmatpush1.msra.mxu0 %v3258_v42  ;;  %1687 = vmatpush1.msra.mxu1 %v3261_v43 }
 0x62d   :  { %1617 = vmatprep.subr.mxu0 %v3264_v44  ;;  %1688 = vmatprep.subr.mxu1 %v3267_v46 }
 0x62e   :  { %1618 = vmatpush1.msra.mxu0 %v3270_v47  ;;  %1689 = vmatpush1.msra.mxu1 %v3273_v48 }
 0x62f   :  { %1619 = vmatprep.subr.mxu0 %v3276_v49  ;;  %1690 = vmatprep.subr.mxu1 %v3279_v50 }
 0x630   :  { %1620 = vmatpush1.msra.mxu0 %v3282_v51  ;;  %1691 = vmatpush1.msra.mxu1 %v3285_v52 }
 0x631   :  { %1621 = vmatprep.subr.mxu0 %v3288_v53  ;;  %1692 = vmatprep.subr.mxu1 %v3291_v55 }
 0x632   :  { %1622 = vmatpush1.msra.mxu0 %v3294_v56  ;;  %1693 = vmatpush1.msra.mxu1 %v3916_v45  ;;  %v1880_v45 = vld [vmem:[%s3666_s8 + $0x78] sm:$0xff] }
 0x633   :  { %1623 = vmatprep.subr.mxu0 %v3917_v0  ;;  %1694 = vmatprep.subr.mxu1 %v3918_v10  ;;  %v1879_v0 = vld [vmem:[%s3666_s8 + $0x70] sm:$0xff]  ;;  %v1878_v10 = vld [vmem:[%s3666_s8 + $0x68] sm:$0xff] }
 0x634   :  { %1624 = vmatpush1.msra.mxu0 %v3919_v7  ;;  %1695 = vmatpush1.msra.mxu1 %v3920_v1  ;;  %v1877_v7 = vld [vmem:[%s3666_s8 + $0x60] sm:$0xff]  ;;  %v1876_v1 = vld [vmem:[%s3666_s8 + $0x58] sm:$0xff] }
 0x635   :  { %1625 = vmatprep.subr.mxu0 %v3921_v6  ;;  %1696 = vmatprep.subr.mxu1 %v3922_v2  ;;  %v1875_v6 = vld [vmem:[%s3666_s8 + $0x50] sm:$0xff]  ;;  %v1874_v2 = vld [vmem:[%s3666_s8 + $0x48] sm:$0xff] }
 0x636   :  { %1626 = vmatpush1.msra.mxu0 %v3923_v4  ;;  %1697 = vmatpush1.msra.mxu1 %v3924_v8  ;;  %v1873_v4 = vld [vmem:[%s3666_s8 + $0x40] sm:$0xff]  ;;  %v1872_v8 = vld [vmem:[%s3666_s8 + $0x38] sm:$0xff] }
 0x637   :  { %1627 = vmatprep.subr.mxu0 %v3925_v3  ;;  %1698 = vmatprep.subr.mxu1 %v3926_v59  ;;  %v1871_v3 = vld [vmem:[%s3666_s8 + $0x30] sm:$0xff]  ;;  %v1870_v59 = vld [vmem:[%s3666_s8 + $0x28] sm:$0xff] }
 0x638   :  { %1628 = vmatpush1.msra.mxu0 %v3927_v63  ;;  %1699 = vmatpush1.msra.mxu1 %v3928_v18  ;;  %v1869_v63 = vld [vmem:[%s3666_s8 + $0x20] sm:$0xff]  ;;  %v1868_v18 = vld [vmem:[%s3666_s8 + $0x18] sm:$0xff] }
 0x639   :  { %1629 = vmatprep.subr.mxu0 %v3929_v9  ;;  %1700 = vmatprep.subr.mxu1 %v3930_v11  ;;  %v3938_v11 = vld [vmem:[#allocation57_spill] sm:$0xff] }
 0x63a   :  { %1630 = vmatpush1.msra.mxu0 %v3931_v27  ;;  %1663 = vmatprep.mubr.f32.mxu0 %v3932_v60 }
 0x63b   :  { %1701 = vmatpush1.msra.mxu1 %v3933_v5  ;;  %1734 = vmatprep.mubr.f32.mxu1 %v3932_v60 }
 0x63c   :  { %2081 = vmatprep.subr.mxu0 %v3932_v60  ;;  %2116 = vmatprep.subr.mxu1 %v3932_v60 }
 0x6db   :  { %v1495_v61 = vpop.f32.mrf.mxu0  ;;  %v1566_v25 = vpop.f32.mrf.mxu1 }
 0x6dc   :  { %v1571_v35 = vadd.f32 %v1495_v61, %v3934_v34  ;;  %v1573_v41 = vadd.f32 %v1566_v25, %v3937_v37  ;;  %v3939_v34 = vld [vmem:[#allocation59_spill] sm:$0xff] }
 0x6dd   :  { %v1497_v38 = vpop.f32.mrf.mxu0  ;;  %v1568_v28 = vpop.f32.mrf.mxu1 }
 0x6de   :  { %v2039_v39 = vmul.f32 -1.442695, %v1571_v35  ;;  %v1572_v24 = vadd.f32 %v1497_v38, %v3935_v40  ;;  %v1574_v31 = vadd.f32 %v1568_v28, %v3936_v29 }
 0x6e0   :  { %2256 = vpow2.f32 %v2039_v39  ;;  %v2040_v26 = vmul.f32 -1.442695, %v1572_v24  ;;  %v2041_v42 = vmul.f32 -1.442695, %v1574_v31  ;;  %v3940_v24 = vld [vmem:[#allocation60_spill] sm:$0xff] }
 0x6e2   :  { %2258 = vpow2.f32 %v2040_v26  ;;  %v3941_v26 = vld [vmem:[#allocation58_spill] sm:$0xff] }
 0x6e3   :  { %2260 = vtanh.f32 %v1573_v41 }
 0x6e4   :  { %2262 = vpow2.f32 %v2041_v42 }
 0x6ed   :  { %v2257_v43 = vpop.eup %2256 }
 0x6ee   :  { %v1578_v44 = vadd.f32 1.0, %v2257_v43 }
 0x6ef   :  { %v2259_v46 = vpop.eup %2258 }
 0x6f0   :  { %2264 = vrcp.f32 %v1578_v44  ;;  %v1584_v47 = vadd.f32 1.0, %v2259_v46  ;;  %v2261_v48 = vpop.eup %2260 }
 0x6f1   :  { %v2263_v49 = vpop.eup %2262 }
 0x6f2   :  { %2266 = vrcp.f32 %v1584_v47  ;;  %v1591_v53 = vadd.f32 1.0, %v2263_v49 }
 0x6f4   :  { %2268 = vrcp.f32 %v1591_v53 }
 0x6fd   :  { %v2265_v50 = vpop.eup %2264 }
 0x6fe   :  { %v1595_v51 = vmul.f32 %v2265_v50, %v2261_v48 }
 0x6ff   :  { %v2267_v52 = vpop.eup %2266 }
 0x700   :  { %v1594_v55 = vmul.f32 %v2267_v52, %v3431_v58  ;;  %v1774_v58 = vld [vmem:[%s3664_s6 + $0x18] sm:$0xff] }
 0x701   :  { %v2269_v36 = vpop.eup %2268 }
 0x702   :  { %v3505_v56 = vadd.f32 %v1595_v51, %v1594_v55 }
 0x704   :  { %2270 = vtanh.f32 %v3505_v56 }
 0x711   :  { %v2271_v33 = vpop.eup %2270 }
 0x712   :  { %v1598_v20 = vmul.f32 %v2271_v33, %v2269_v36  ;;  %v1867_v36 = vld [vmem:[%s3666_s8 + $0x10] sm:$0xff]  ;;  %v1865_v33 = vld [vmem:[%s3666_s8] sm:$0xff] }
 0x714   :  { %1664 = vmatmul.mubr.f32.vlgmr.msra.gmra.mxu0 %v1598_v20  ;;  %1735 = vmatmul.mubr.f32.vlgmr.msra.gmra.mxu1 %v1598_v20  ;;  %v2045_v20 = vld [vmem:[%s3665_s7] ss:$0 sm:$0xff] }
 0x715   :  { %2082 = vmatpush3.msra.mxu0 %v1786_v30  ;;  %2113 = vmatprep.mubr.msk.f32.mxu0 %vm2422_vm1, %v3932_v60 }
 0x716   :  { %2083 = vmatprep.subr.mxu0 %v3932_v60  ;;  %2148 = vmatprep.mubr.msk.f32.mxu1 %vm2422_vm1, %v3932_v60 }
 0x717   :  { %2084 = vmatpush3.msra.mxu0 %v1785_v62  ;;  %2117 = vmatpush3.msra.mxu1 %v1880_v45 }
 0x718   :  { %2085 = vmatprep.subr.mxu0 %v3932_v60  ;;  %2118 = vmatprep.subr.mxu1 %v3932_v60 }
 0x719   :  { %2086 = vmatpush3.msra.mxu0 %v1784_v19  ;;  %2119 = vmatpush3.msra.mxu1 %v1879_v0 }
 0x71a   :  { %2087 = vmatprep.subr.mxu0 %v3932_v60  ;;  %2120 = vmatprep.subr.mxu1 %v3932_v60 }
 0x71b   :  { %2088 = vmatpush3.msra.mxu0 %v1783_v14  ;;  %2121 = vmatpush3.msra.mxu1 %v1878_v10 }
 0x71c   :  { %2089 = vmatprep.subr.mxu0 %v3932_v60  ;;  %2122 = vmatprep.subr.mxu1 %v3932_v60 }
 0x71d   :  { %2090 = vmatpush3.msra.mxu0 %v1782_v15  ;;  %2123 = vmatpush3.msra.mxu1 %v1877_v7  ;;  %v2423_v15 = vmov 4  }
 0x71e   :  { %2091 = vmatprep.subr.mxu0 %v3932_v60  ;;  %2124 = vmatprep.subr.mxu1 %v3932_v60 }
 0x71f   :  { %2092 = vmatpush3.msra.mxu0 %v1781_v21  ;;  %2125 = vmatpush3.msra.mxu1 %v1876_v1  ;;  %v2046_v21 = vld [vmem:[%s3667_s9] ss:$0 sm:$0xff] }
 0x720   :  { %2093 = vmatprep.subr.mxu0 %v3932_v60  ;;  %2126 = vmatprep.subr.mxu1 %v3932_v60 }
 0x721   :  { %2094 = vmatpush3.msra.mxu0 %v1780_v22  ;;  %2127 = vmatpush3.msra.mxu1 %v1875_v6 }
 0x722   :  { %2095 = vmatprep.subr.mxu0 %v3932_v60  ;;  %2128 = vmatprep.subr.mxu1 %v3932_v60 }
 0x723   :  { %2096 = vmatpush3.msra.mxu0 %v1779_v17  ;;  %2129 = vmatpush3.msra.mxu1 %v1874_v2 }
 0x724   :  { %2097 = vmatprep.subr.mxu0 %v3932_v60  ;;  %2130 = vmatprep.subr.mxu1 %v3932_v60 }
 0x725   :  { %2098 = vmatpush3.msra.mxu0 %v1778_v13  ;;  %2131 = vmatpush3.msra.mxu1 %v1873_v4 }
 0x726   :  { %2099 = vmatprep.subr.mxu0 %v3932_v60  ;;  %2132 = vmatprep.subr.mxu1 %v3932_v60 }
 0x727   :  { %2100 = vmatpush3.msra.mxu0 %v1777_v16  ;;  %2133 = vmatpush3.msra.mxu1 %v1872_v8 }
 0x728   :  { %2101 = vmatprep.subr.mxu0 %v3932_v60  ;;  %2134 = vmatprep.subr.mxu1 %v3932_v60 }
 0x729   :  { %2102 = vmatpush3.msra.mxu0 %v1776_v12  ;;  %2135 = vmatpush3.msra.mxu1 %v1871_v3 }
 0x72a   :  { %2103 = vmatprep.subr.mxu0 %v3932_v60  ;;  %2136 = vmatprep.subr.mxu1 %v3932_v60 }
 0x72b   :  { %2104 = vmatpush3.msra.mxu0 %v1775_v32  ;;  %2137 = vmatpush3.msra.mxu1 %v1870_v59 }
 0x72c   :  { %2105 = vmatprep.subr.mxu0 %v3932_v60  ;;  %2138 = vmatprep.subr.mxu1 %v3932_v60 }
 0x72d   :  { %2106 = vmatpush3.msra.mxu0 %v1774_v58  ;;  %2139 = vmatpush3.msra.mxu1 %v1869_v63 }
 0x72e   :  { %2107 = vmatprep.subr.mxu0 %v3932_v60  ;;  %2140 = vmatprep.subr.mxu1 %v3932_v60 }
 0x72f   :  { %2108 = vmatpush3.msra.mxu0 %v1773_v57  ;;  %2141 = vmatpush3.msra.mxu1 %v1868_v18 }
 0x730   :  { %2109 = vmatprep.subr.mxu0 %v3932_v60  ;;  %2142 = vmatprep.subr.mxu1 %v3932_v60 }
 0x731   :  { %2110 = vmatpush3.msra.mxu0 %v1772_v54  ;;  %2143 = vmatpush3.msra.mxu1 %v1867_v36 }
 0x732   :  { %2111 = vmatprep.subr.mxu0 %v3932_v60  ;;  %2144 = vmatprep.subr.mxu1 %v3932_v60 }
 0x733   :  { %2112 = vmatpush3.msra.mxu0 %v1771_v23  ;;  %2159 = vset.pattern.permute.xlu0 %v2423_v15 }
 0x7d4   :  { %v1665_v9 = vpop.f32.mrf.mxu0  ;;  %v1736_v38 = vpop.f32.mrf.mxu1 }
 0x7d5   :  { %v1741_v27 = vadd.f32 %v1665_v9, %v3938_v11  ;;  %v1743_v28 = vadd.f32 %v1736_v38, %v3941_v26 }
 0x7d6   :  { %v1667_v5 = vpop.f32.mrf.mxu0  ;;  %v1738_v40 = vpop.f32.mrf.mxu1 }
 0x7d7   :  { %v2042_v61 = vmul.f32 -1.442695, %v1741_v27  ;;  %v1742_v35 = vadd.f32 %v1667_v5, %v3939_v34  ;;  %v1744_v25 = vadd.f32 %v1738_v40, %v3940_v24 }
 0x7d9   :  { %2272 = vpow2.f32 %v2042_v61  ;;  %v2043_v39 = vmul.f32 -1.442695, %v1742_v35  ;;  %v2044_v29 = vmul.f32 -1.442695, %v1744_v25 }
 0x7db   :  { %2274 = vpow2.f32 %v2043_v39 }
 0x7dc   :  { %2276 = vtanh.f32 %v1743_v28 }
 0x7dd   :  { %2278 = vpow2.f32 %v2044_v29 }
 0x7e6   :  { %v2273_v31 = vpop.eup %2272 }
 0x7e7   :  { %v1748_v37 = vadd.f32 1.0, %v2273_v31 }
 0x7e8   :  { %v2275_v41 = vpop.eup %2274 }
 0x7e9   :  { %2280 = vrcp.f32 %v1748_v37  ;;  %v1754_v42 = vadd.f32 1.0, %v2275_v41  ;;  %v2277_v43 = vpop.eup %2276 }
 0x7ea   :  { %v2279_v44 = vpop.eup %2278 }
 0x7eb   :  { %2282 = vrcp.f32 %v1754_v42  ;;  %v1761_v49 = vadd.f32 1.0, %v2279_v44 }
 0x7ed   :  { %2284 = vrcp.f32 %v1761_v49 }
 0x7f6   :  { %v2281_v46 = vpop.eup %2280 }
 0x7f7   :  { %v1765_v47 = vmul.f32 %v2281_v46, %v2277_v43 }
 0x7f8   :  { %v2283_v48 = vpop.eup %2282 }
 0x7f9   :  { %v1764_v50 = vmul.f32 %v2283_v48, %v3505_v56  ;;  %v1866_v56 = vld [vmem:[%s3666_s8 + $0x8] sm:$0xff]  ;;  %s2424_s8 = smov [#allocation5]  }
 0x7fa   :  { %v2285_v52 = vpop.eup %2284  ;;  %2145 = vmatpush3.msra.mxu1 %v1866_v56  ;;  %s1980_s7 = sshll.u32 %s2424_s8, 4  ;;  %s1981_s7 = int_to_ptr.vmem [resolvable:$true] %s1980_s7 }
 0x7fb   :  { %v1766_v51 = vadd.f32 %v1765_v47, %v1764_v50  ;;  %2146 = vmatprep.subr.mxu1 %v3932_v60  ;;  %s2372_s1 = scalar_lea.vmem %s1981_s7, 128  ;;  %p2377_p6 = scmp.lt.s32.totalorder %s1981_s7, %s1981_s7 }
 0x7fc   :  { %2147 = vmatpush3.msra.mxu1 %v1865_v33  ;;  %p2373_p5 = scmp.ne.s32.totalorder %s1981_s7, %s2372_s1  ;;  %p2378_p7 = scmp.lt.s32.totalorder %s2372_s1, %s2372_s1 }
 0x7fd   :  { %1770 = vst [vmem:[#allocation6] sm:$0xff] %v1766_v51  ;;  %2286 = vtanh.f32 %v1766_v51 }
 0x7fe   :  { %p2379_p8 = por %p2378_p7, %p2377_p6 }
 0x800   :  { %p2380_p9 = pnand %p2379_p8, %p2373_p5 }
 0x80a   :  { %v2287_v53 = vpop.eup %2286 }
 0x80b   :  { %v1768_v55 = vmul.f32 %v2287_v53, %v2285_v52 }
 0x80d   :  { %2114 = vmatmul.mubr.f32.vlgmr.msra.gmra.mxu0 %v1768_v55  ;;  %1769 = vst [vmem:[#allocation5] sm:$0xff] %v1768_v55 }
 0x8cd   :  { %v1860_v30 = vpop.f32.mrf.mxu0 }
 0x8ce   :  { %v1861_v62 = vadd.f32 %v2045_v20, %v1860_v30 }
 0x8cf   :  { %v2115_v19 = vpop.f32.mrf.mxu0 }
 0x8d0   :  { %v1864_v14 = vmax.f32 %v1861_v62, 0.0 }
 0x8d2   :  { %2149 = vmatmul.mubr.f32.vlgmr.msra.gmra.mxu1 %v1864_v14 }
 0x992   :  { %v1954_v22 = vpop.f32.mrf.mxu1 }
 0x993   :  { %v1955_v17 = vadd.f32 %v2046_v21, %v1954_v22 }
 0x994   :  { %v2150_v60 = vpop.f32.mrf.mxu1 }
 0x995   :  { %v1959_v13 = vsel %vm1958_vm2, %v1955_v17, 0.0 }
 0x996   :  { %1960 = vadd.xlane.f32.xlu0 %v1959_v13 }
 0x997   :  { %2383 = shalt.err (!%p2380_p9)
}
 0x998   :  { %1983 = dma.vmem_to_hbm [thread:$0]  %s1981_s7, 128, %s3669_s11, [#allocation4]  }
 0x999   :  { %s2392_s5 = scalar_lea.vmem %s1991_s21, 128  ;;  %p2397_p11 = scmp.lt.s32.totalorder %s1991_s21, %s1991_s21 }
 0x99a   :  { %p2393_p10 = scmp.ne.s32.totalorder %s1991_s21, %s2392_s5  ;;  %p2398_p12 = scmp.lt.s32.totalorder %s2392_s5, %s2392_s5 }
 0x99c   :  { %p2399_p13 = por %p2398_p12, %p2397_p11 }
 0x99e   :  { %p2400_p0 = pnand %p2399_p13, %p2393_p10 }
 0x9ac   :  { %1967 = vperm.xlu0 %2159, %v1955_v17  }
 0x9ad   :  { %2403 = shalt.err (!%p2400_p0)
}
 0x9ae   :  { %1993 = dma.vmem_to_hbm [thread:$0]  %s1991_s21, 128, %s3670_s12, [#allocation7]  }
 0xa1f   :  { %v1961_v16 = vpop.xlane.xlu0 %1960 }
 0xa20   :  { %v1963_v12 = vmul.f32 0.25, %v1961_v16 }
 0xa22   :  { %v1964_v32 = vsub.f32 %v1955_v17, %v1963_v12 }
 0xa27   :  { %v1968_v58 = vpop.permute.xlu0 %1967 }
 0xa28   :  { %v1970_v57 = vadd.f32 %v1968_v58, %v1964_v32 }
 0xa2a   :  { %1971 = vst.msk [vmem:[%s3668_s10] sm:$0xff] %vm1958_vm2, %v1970_v57 }
 0xa2b   :  { %2414 = dma.done.wait [#allocation4], 128  }
 0xa2c   :  { %2415 = vsyncadd [#allocation4], 4294967168 }
 0xa2d   :  { %2416 = dma.done.wait [#allocation7], 128  }
 0xa2e   :  { %2417 = vsyncadd [#allocation7], 4294967168 }
 0xa2f   :  { %2002 = vsyncpa [#allocation3], 1 }
 0xa30   :  { %2003 = vsyncpa [#allocation4], 1 }
 0xa31   :  { %2004 = vsyncpa [#allocation7], 1 }

</bundles_post_ra>
